<compile_context>
chip_gen: v7x
topology: tpu7x:2x2x1
jax: 0.10.0
libtpu: 0.0.40
codegen_flags: <defaults>
</compile_context>

<pallas_src>
import jax
import jax.numpy as jnp
from jax.experimental import pallas as pl
from jax.experimental.pallas import tpu as pltpu


# ----------------------------------------------------------------------------
# Fused kernel: one-hot embedding gather + hoisted layer-0 input gates +
# n_layers GRU recurrence (unrolled over small static T) + batched head.
# ----------------------------------------------------------------------------
def _make_fused_kernel(n_layers, bt, T, E, H, V):
    def kernel(*refs):
        ids_ref = refs[0]                               # (T*bt, 1) int32, rows t-major
        emb_ref = refs[1]                               # (V, E)
        lrefs = refs[2:2 + 4 * n_layers]                # per layer: wih, whh, b_g, b_in
        head = refs[2 + 4 * n_layers:6 + 4 * n_layers]  # wfc, bfc, wout, bout
        out_ref = refs[6 + 4 * n_layers]                # (bt, T)

        # ---- Embedding gather as ONE MXU matmul (off the recurrent chain). ----
        ids = ids_ref[...]                                            # (T*bt, 1)
        onehot = (ids == jax.lax.broadcasted_iota(
            jnp.int32, (T * bt, V), 1)).astype(jnp.float32)           # (T*bt, V)
        x_all = jnp.dot(onehot, emb_ref[...],
                        preferred_element_type=jnp.float32)           # (T*bt, E)

        # ---- Layer-0 input gates for ALL steps in one matmul (hoisted). ----
        gi0_all = jnp.dot(x_all, lrefs[0][...],
                          preferred_element_type=jnp.float32)         # (T*bt, 3H)

        # ---- Hoist recurrent weights; pre-broadcast biases once (no per-step
        #      broadcast_in_dim re-materialization inside the unroll). ----
        layers = []
        for l in range(n_layers):
            wih = lrefs[4 * l][...] if l > 0 else None  # layer-0 gi already computed
            whh = lrefs[4 * l + 1][...]                 # (H, 3H)
            b_g = jnp.broadcast_to(lrefs[4 * l + 2][...], (bt, 3 * H))
            b_in = jnp.broadcast_to(lrefs[4 * l + 3][...], (bt, H))
            layers.append((wih, whh, b_g, b_in))

        h = [jnp.zeros((bt, H), jnp.float32) for _ in range(n_layers)]
        hs = []
        # TODO(synk): for T >~ 32 replace the full unroll with
        # lax.fori_loop(..., unroll=2-4) over a VMEM scratch to bound vreg pressure.
        for t in range(T):
            gi = gi0_all[t * bt:(t + 1) * bt, :]
            x = None
            for l in range(n_layers):
                wih, whh, b_g, b_in = layers[l]
                if l > 0:
                    gi = jnp.dot(x, wih, preferred_element_type=jnp.float32)
                gh = jnp.dot(h[l], whh, preferred_element_type=jnp.float32) + b_g
                rz = jax.nn.sigmoid(gi[:, :2 * H] + gh[:, :2 * H])    # one EUP pass for r,z
                r, z = rz[:, :H], rz[:, H:]
                n = jnp.tanh(gi[:, 2 * H:] + b_in + r * gh[:, 2 * H:])
                h[l] = (1.0 - z) * n + z * h[l]
                x = h[l]
            hs.append(x)

        # ---- Head batched over ALL time steps (weights loaded only now). ----
        wfc_ref, bfc_ref, wout_ref, bout_ref = head
        h_all = jnp.concatenate(hs, axis=0)                           # (T*bt, H) t-major
        a = jnp.maximum(
            jnp.dot(h_all, wfc_ref[...], preferred_element_type=jnp.float32)
            + bfc_ref[...], 0.0)                                      # (T*bt, H)
        res = 0.1 + jax.nn.sigmoid(
            jnp.sum(a * wout_ref[...], axis=-1, keepdims=True)
            + bout_ref[...])                                          # (T*bt, 1)
        for t in range(T):                                            # T tiny column stores
            out_ref[:, pl.ds(t, 1)] = res[t * bt:(t + 1) * bt, :]

    return kernel


# ----------------------------------------------------------------------------
# Forward wrapper: one pallas_call, batch-tile grid ("parallel" for v7x's two
# TensorCores), all weights as whole-array VMEM blocks.
# ----------------------------------------------------------------------------
def meta_gru4rec_forward(input_ids, params, *, block_b=None):
    """input_ids: (B, T) int. Returns (B, T) float32 in (0.1, 1.1)."""
    B, T = input_ids.shape
    V, E = params["emb"].shape
    H = params["wfc"].shape[0]
    n_layers = len(params["gru_wih"])

    # Batch tiling: one grid step per batch tile; tiles must be a multiple of 8
    # (sublanes) whenever there is more than one tile.
    if block_b is None:
        block_b = B if B <= 8 else 64
    if block_b >= B:
        bt, nb = B, 1
    else:
        bt = max(8, (block_b // 8) * 8)
        nb = -(-B // bt)
    Bp = nb * bt

    ids = jnp.clip(input_ids.astype(jnp.int32), 0, V - 1)   # guard OOB ids
    if Bp != B:
        ids = jnp.concatenate([ids, jnp.zeros((Bp - B, T), jnp.int32)], axis=0)
    # t-major flat ids per batch tile: (nb, T*bt, 1), row = t*bt + b.
    ids3 = ids.reshape(nb, bt, T).transpose(0, 2, 1).reshape(nb, T * bt, 1)

    def full(shape):
        return pl.BlockSpec(shape, lambda i, _n=len(shape): (0,) * _n)

    args = [ids3, params["emb"]]
    in_specs = [pl.BlockSpec((None, T * bt, 1), lambda i: (i, 0, 0)),
                full(params["emb"].shape)]
    for l in range(n_layers):
        bih, bhh = params["gru_bih"][l], params["gru_bhh"][l]
        # Fold r/z biases (b_ih + b_hh) into the gh path; b_hh_n stays with gh
        # (it must sit inside r * (.)), b_ih_n is the separate n-gate input add.
        b_g = jnp.concatenate(
            [bih[:, :2 * H] + bhh[:, :2 * H], bhh[:, 2 * H:]], axis=1)  # (1, 3H)
        b_in = bih[:, 2 * H:]                                            # (1, H)
        wih, whh = params["gru_wih"][l], params["gru_whh"][l]
        args += [wih, whh, b_g, b_in]
        in_specs += [full(wih.shape), full(whh.shape),
                     full(b_g.shape), full(b_in.shape)]
    args += [params["wfc"], params["bfc"], params["wout"], params["bout"]]
    in_specs += [full(params["wfc"].shape), full(params["bfc"].shape),
                 full(params["wout"].shape), full(params["bout"].shape)]

    # TODO(synk): for realistic vocab sizes keep `emb` in HBM (pl.ANY) and DMA /
    # Element-map only the needed rows (v7x has only 64 MiB VMEM); also set
    # pltpu.CompilerParams(vmem_limit_bytes=...) once the table grows past the
    # default scoped-VMEM limit.  At V=52 the whole-table VMEM block is ideal.
    out = pl.pallas_call(
        _make_fused_kernel(n_layers, bt, T, E, H, V),
        grid=(nb,),
        out_shape=jax.ShapeDtypeStruct((Bp, T), jnp.float32),
        in_specs=in_specs,
        out_specs=pl.BlockSpec((bt, T), lambda i: (i, 0)),
        compiler_params=pltpu.CompilerParams(
            dimension_semantics=("parallel",)),
    )(*args)
    return out[:B] if Bp != B else out


# ----------------------------------------------------------------------------
# Pure-JAX reference (canonical PyTorch GRU equations, unfolded biases) used to
# validate the fused kernel (gather, bias folding, head, output layout).
# ----------------------------------------------------------------------------
def reference_forward(input_ids, params):
    H = params["wfc"].shape[0]
    hi = jax.lax.Precision.HIGHEST
    # Dropout inside MetaBERTEmbedding is a no-op at inference.
    x = jnp.take(params["emb"], input_ids, axis=0)          # (B, T, E)
    B, _, _ = x.shape
    seq = jnp.transpose(x, (1, 0, 2))                       # (T, B, E)
    for l in range(len(params["gru_wih"])):
        wih, whh = params["gru_wih"][l], params["gru_whh"][l]
        bih, bhh = params["gru_bih"][l], params["gru_bhh"][l]

        def step(h, xt, wih=wih, whh=whh, bih=bih, bhh=bhh):
            gi = jnp.dot(xt, wih, precision=hi) + bih
            gh = jnp.dot(h, whh, precision=hi) + bhh
            r = jax.nn.sigmoid(gi[:, :H] + gh[:, :H])
            z = jax.nn.sigmoid(gi[:, H:2 * H] + gh[:, H:2 * H])
            n = jnp.tanh(gi[:, 2 * H:] + r * gh[:, 2 * H:])
            h_new = (1.0 - z) * n + z * h
            return h_new, h_new

        _, seq = jax.lax.scan(step, jnp.zeros((B, H), jnp.float32), seq)
    a = jnp.maximum(
        jnp.einsum("tbh,hk->tbk", seq, params["wfc"], precision=hi)
        + params["bfc"], 0.0)
    logits = jnp.sum(a * params["wout"], axis=-1) + params["bout"][0, 0]  # (T, B)
    return 0.1 + jax.nn.sigmoid(logits.T)                                 # (B, T)


# ----------------------------------------------------------------------------
# Deterministic synthetic parameters (not a checkpoint).  Linear weights are
# stored as (in, out), i.e. transposed vs. PyTorch, except wout which matches
# torch Linear(H,1).weight layout (1, H).
# ----------------------------------------------------------------------------
def init_params(key, vocab_size, embed_dim, hidden, n_layers):
    keys = jax.random.split(key, 5 + 4 * n_layers)
    s = 0.1
    params = {
        "emb": s * jax.random.normal(keys[0], (vocab_size, embed_dim), jnp.float32),
        "wfc": s * jax.random.normal(keys[1], (hidden, hidden), jnp.float32),
        "bfc": s * jax.random.normal(keys[2], (1, hidden), jnp.float32),
        "wout": s * jax.random.normal(keys[3], (1, hidden), jnp.float32),
        "bout": s * jax.random.normal(keys[4], (1, 1), jnp.float32),
        "gru_wih": [], "gru_whh": [], "gru_bih": [], "gru_bhh": [],
    }
    for l in range(n_layers):
        in_dim = embed_dim if l == 0 else hidden
        k = keys[5 + 4 * l: 9 + 4 * l]
        params["gru_wih"].append(
            s * jax.random.normal(k[0], (in_dim, 3 * hidden), jnp.float32))
        params["gru_whh"].append(
            s * jax.random.normal(k[1], (hidden, 3 * hidden), jnp.float32))
        params["gru_bih"].append(
            s * jax.random.normal(k[2], (1, 3 * hidden), jnp.float32))
        params["gru_bhh"].append(
            s * jax.random.normal(k[3], (1, 3 * hidden), jnp.float32))
    return params


if __name__ == "__main__":
    # Small config consistent with the module:
    #   num_items=50 -> vocab_size=52, max_seq_len=9 -> T = max_len = 8,
    #   gru4rec_embedding_dim=32, gru4rec_hidden_size=32, gru4rec_n_layers=2.
    B, T = 2, 8
    NUM_ITEMS = 50
    VOCAB = NUM_ITEMS + 2
    E = 32
    H = 32
    N_LAYERS = 2

    key = jax.random.PRNGKey(0)
    k_param, k_ids = jax.random.split(key)
    params = init_params(k_param, VOCAB, E, H, N_LAYERS)
    input_ids = jax.random.randint(k_ids, (B, T), 0, VOCAB, dtype=jnp.int32)

    fwd = jax.jit(meta_gru4rec_forward)
    out = jax.block_until_ready(fwd(input_ids, params))
    assert out.shape == (B, T), out.shape

    ref = jax.block_until_ready(reference_forward(input_ids, params))
    max_err = float(jnp.max(jnp.abs(out - ref)))
    assert jnp.allclose(out, ref, rtol=2e-3, atol=2e-3), max_err
    assert bool(jnp.all(out > 0.1)) and bool(jnp.all(out < 1.1))
    print("KERNEL_OK")
</pallas_src>

<mosaic_0001>
module attributes {stable_mosaic.version = 11 : i64} {
  func.func @kernel(%arg0: i32, %arg1: memref<1x16x1xi32, #tpu.memory_space<vmem>>, %arg2: memref<52x32xf32, #tpu.memory_space<vmem>>, %arg3: memref<32x96xf32, #tpu.memory_space<vmem>>, %arg4: memref<32x96xf32, #tpu.memory_space<vmem>>, %arg5: memref<1x96xf32, #tpu.memory_space<vmem>>, %arg6: memref<1x32xf32, #tpu.memory_space<vmem>>, %arg7: memref<32x96xf32, #tpu.memory_space<vmem>>, %arg8: memref<32x96xf32, #tpu.memory_space<vmem>>, %arg9: memref<1x96xf32, #tpu.memory_space<vmem>>, %arg10: memref<1x32xf32, #tpu.memory_space<vmem>>, %arg11: memref<32x32xf32, #tpu.memory_space<vmem>>, %arg12: memref<1x32xf32, #tpu.memory_space<vmem>>, %arg13: memref<1x32xf32, #tpu.memory_space<vmem>>, %arg14: memref<1x1xf32, #tpu.memory_space<vmem>>, %arg15: memref<2x8xf32, #tpu.memory_space<vmem>>) attributes {dimension_semantics = [#tpu.dimension_semantics<parallel>], iteration_bounds = array<i64: 1>, scalar_prefetch = 0 : i64, scratch_operands = 0 : i64, tpu.core_type = #tpu.core_type<tc>, window_params = [{transform_indices = @transform_0, window_bounds = array<i64: 1, 16, 1>}, {pipeline_mode = #tpu.pipeline_mode<synchronous>, transform_indices = @transform_1, window_bounds = array<i64: 52, 32>}, {pipeline_mode = #tpu.pipeline_mode<synchronous>, transform_indices = @transform_2, window_bounds = array<i64: 32, 96>}, {pipeline_mode = #tpu.pipeline_mode<synchronous>, transform_indices = @transform_3, window_bounds = array<i64: 32, 96>}, {pipeline_mode = #tpu.pipeline_mode<synchronous>, transform_indices = @transform_4, window_bounds = array<i64: 1, 96>}, {pipeline_mode = #tpu.pipeline_mode<synchronous>, transform_indices = @transform_5, window_bounds = array<i64: 1, 32>}, {pipeline_mode = #tpu.pipeline_mode<synchronous>, transform_indices = @transform_6, window_bounds = array<i64: 32, 96>}, {pipeline_mode = #tpu.pipeline_mode<synchronous>, transform_indices = @transform_7, window_bounds = array<i64: 32, 96>}, {pipeline_mode = #tpu.pipeline_mode<synchronous>, transform_indices = @transform_8, window_bounds = array<i64: 1, 96>}, {pipeline_mode = #tpu.pipeline_mode<synchronous>, transform_indices = @transform_9, window_bounds = array<i64: 1, 32>}, {pipeline_mode = #tpu.pipeline_mode<synchronous>, transform_indices = @transform_10, window_bounds = array<i64: 32, 32>}, {pipeline_mode = #tpu.pipeline_mode<synchronous>, transform_indices = @transform_11, window_bounds = array<i64: 1, 32>}, {pipeline_mode = #tpu.pipeline_mode<synchronous>, transform_indices = @transform_12, window_bounds = array<i64: 1, 32>}, {pipeline_mode = #tpu.pipeline_mode<synchronous>, transform_indices = @transform_13, window_bounds = array<i64: 1, 1>}, {transform_indices = @transform_14, window_bounds = array<i64: 2, 8>}]} {
    %c0 = arith.constant 0 : index
    %c0_0 = arith.constant 0 : index
    %c0_1 = arith.constant 0 : index
    %0 = vector.load %arg1[%c0, %c0_0, %c0_1] : memref<1x16x1xi32, #tpu.memory_space<vmem>>, vector<1x16x1xi32>
    %1 = vector.shape_cast %0 : vector<1x16x1xi32> to vector<16x1xi32>
    %2 = tpu.iota {dimensions = array<i32: 1>} : vector<16x52xi32>
    %3 = vector.broadcast %1 : vector<16x1xi32> to vector<16x52xi32>
    %4 = arith.cmpi eq, %3, %2 : vector<16x52xi32>
    %5 = arith.extui %4 : vector<16x52xi1> to vector<16x52xi32>
    %6 = arith.sitofp %5 : vector<16x52xi32> to vector<16x52xf32>
    %c0_2 = arith.constant 0 : index
    %c0_3 = arith.constant 0 : index
    %7 = vector.load %arg2[%c0_2, %c0_3] : memref<52x32xf32, #tpu.memory_space<vmem>>, vector<52x32xf32>
    %cst = arith.constant dense<0.000000e+00> : vector<16x32xf32>
    %8 = tpu.matmul %6, %7, %cst {dimension_numbers = #tpu.dot_dimension_numbers<[1], [0], [0], [1], [0, 0, 1, 1], [], []>} : vector<16x52xf32>, vector<52x32xf32>, vector<16x32xf32> -> vector<16x32xf32>
    %c0_4 = arith.constant 0 : index
    %c0_5 = arith.constant 0 : index
    %9 = vector.load %arg3[%c0_4, %c0_5] : memref<32x96xf32, #tpu.memory_space<vmem>>, vector<32x96xf32>
    %cst_6 = arith.constant dense<0.000000e+00> : vector<16x96xf32>
    %10 = tpu.matmul %8, %9, %cst_6 {dimension_numbers = #tpu.dot_dimension_numbers<[1], [0], [0], [1], [0, 0, 1, 1], [], []>} : vector<16x32xf32>, vector<32x96xf32>, vector<16x96xf32> -> vector<16x96xf32>
    %c0_7 = arith.constant 0 : index
    %c0_8 = arith.constant 0 : index
    %11 = vector.load %arg4[%c0_7, %c0_8] : memref<32x96xf32, #tpu.memory_space<vmem>>, vector<32x96xf32>
    %c0_9 = arith.constant 0 : index
    %c0_10 = arith.constant 0 : index
    %12 = vector.load %arg5[%c0_9, %c0_10] : memref<1x96xf32, #tpu.memory_space<vmem>>, vector<1x96xf32>
    %13 = vector.shape_cast %12 : vector<1x96xf32> to vector<1x96xf32>
    %14 = vector.broadcast %13 : vector<1x96xf32> to vector<2x96xf32>
    %c0_11 = arith.constant 0 : index
    %c0_12 = arith.constant 0 : index
    %15 = vector.load %arg6[%c0_11, %c0_12] : memref<1x32xf32, #tpu.memory_space<vmem>>, vector<1x32xf32>
    %16 = vector.shape_cast %15 : vector<1x32xf32> to vector<1x32xf32>
    %17 = vector.broadcast %16 : vector<1x32xf32> to vector<2x32xf32>
    %c0_13 = arith.constant 0 : index
    %c0_14 = arith.constant 0 : index
    %18 = vector.load %arg7[%c0_13, %c0_14] : memref<32x96xf32, #tpu.memory_space<vmem>>, vector<32x96xf32>
    %c0_15 = arith.constant 0 : index
    %c0_16 = arith.constant 0 : index
    %19 = vector.load %arg8[%c0_15, %c0_16] : memref<32x96xf32, #tpu.memory_space<vmem>>, vector<32x96xf32>
    %c0_17 = arith.constant 0 : index
    %c0_18 = arith.constant 0 : index
    %20 = vector.load %arg9[%c0_17, %c0_18] : memref<1x96xf32, #tpu.memory_space<vmem>>, vector<1x96xf32>
    %21 = vector.shape_cast %20 : vector<1x96xf32> to vector<1x96xf32>
    %22 = vector.broadcast %21 : vector<1x96xf32> to vector<2x96xf32>
    %c0_19 = arith.constant 0 : index
    %c0_20 = arith.constant 0 : index
    %23 = vector.load %arg10[%c0_19, %c0_20] : memref<1x32xf32, #tpu.memory_space<vmem>>, vector<1x32xf32>
    %24 = vector.shape_cast %23 : vector<1x32xf32> to vector<1x32xf32>
    %25 = vector.broadcast %24 : vector<1x32xf32> to vector<2x32xf32>
    %cst_21 = arith.constant 0.000000e+00 : f32
    %26 = vector.broadcast %cst_21 : f32 to vector<2x32xf32>
    %cst_22 = arith.constant 0.000000e+00 : f32
    %27 = vector.broadcast %cst_22 : f32 to vector<2x32xf32>
    %28 = vector.extract_strided_slice %10 {offsets = [0, 0], sizes = [2, 96], strides = [1, 1]} : vector<16x96xf32> to vector<2x96xf32>
    %cst_23 = arith.constant dense<0.000000e+00> : vector<2x96xf32>
    %29 = tpu.matmul %26, %11, %cst_23 {dimension_numbers = #tpu.dot_dimension_numbers<[1], [0], [0], [1], [0, 0, 1, 1], [], []>} : vector<2x32xf32>, vector<32x96xf32>, vector<2x96xf32> -> vector<2x96xf32>
    %30 = arith.addf %29, %14 : vector<2x96xf32>
    %31 = vector.extract_strided_slice %28 {offsets = [0, 0], sizes = [2, 64], strides = [1, 1]} : vector<2x96xf32> to vector<2x64xf32>
    %32 = vector.extract_strided_slice %30 {offsets = [0, 0], sizes = [2, 64], strides = [1, 1]} : vector<2x96xf32> to vector<2x64xf32>
    %33 = arith.addf %31, %32 : vector<2x64xf32>
    %34 = arith.negf %33 : vector<2x64xf32>
    %35 = math.exp %34 : vector<2x64xf32>
    %cst_24 = arith.constant 1.000000e+00 : f32
    %36 = vector.broadcast %cst_24 : f32 to vector<2x64xf32>
    %37 = arith.addf %36, %35 : vector<2x64xf32>
    %38 = arith.divf %36, %37 : vector<2x64xf32>
    %39 = vector.extract_strided_slice %38 {offsets = [0, 0], sizes = [2, 32], strides = [1, 1]} : vector<2x64xf32> to vector<2x32xf32>
    %40 = vector.extract_strided_slice %38 {offsets = [0, 32], sizes = [2, 32], strides = [1, 1]} : vector<2x64xf32> to vector<2x32xf32>
    %41 = vector.extract_strided_slice %28 {offsets = [0, 64], sizes = [2, 32], strides = [1, 1]} : vector<2x96xf32> to vector<2x32xf32>
    %42 = arith.addf %41, %17 : vector<2x32xf32>
    %43 = vector.extract_strided_slice %30 {offsets = [0, 64], sizes = [2, 32], strides = [1, 1]} : vector<2x96xf32> to vector<2x32xf32>
    %44 = arith.mulf %39, %43 : vector<2x32xf32>
    %45 = arith.addf %42, %44 : vector<2x32xf32>
    %46 = math.tanh %45 : vector<2x32xf32>
    %cst_25 = arith.constant 1.000000e+00 : f32
    %47 = vector.broadcast %cst_25 : f32 to vector<2x32xf32>
    %48 = arith.subf %47, %40 : vector<2x32xf32>
    %49 = arith.mulf %48, %46 : vector<2x32xf32>
    %50 = arith.mulf %40, %26 : vector<2x32xf32>
    %51 = arith.addf %49, %50 : vector<2x32xf32>
    %cst_26 = arith.constant dense<0.000000e+00> : vector<2x96xf32>
    %52 = tpu.matmul %51, %18, %cst_26 {dimension_numbers = #tpu.dot_dimension_numbers<[1], [0], [0], [1], [0, 0, 1, 1], [], []>} : vector<2x32xf32>, vector<32x96xf32>, vector<2x96xf32> -> vector<2x96xf32>
    %cst_27 = arith.constant dense<0.000000e+00> : vector<2x96xf32>
    %53 = tpu.matmul %27, %19, %cst_27 {dimension_numbers = #tpu.dot_dimension_numbers<[1], [0], [0], [1], [0, 0, 1, 1], [], []>} : vector<2x32xf32>, vector<32x96xf32>, vector<2x96xf32> -> vector<2x96xf32>
    %54 = arith.addf %53, %22 : vector<2x96xf32>
    %55 = vector.extract_strided_slice %52 {offsets = [0, 0], sizes = [2, 64], strides = [1, 1]} : vector<2x96xf32> to vector<2x64xf32>
    %56 = vector.extract_strided_slice %54 {offsets = [0, 0], sizes = [2, 64], strides = [1, 1]} : vector<2x96xf32> to vector<2x64xf32>
    %57 = arith.addf %55, %56 : vector<2x64xf32>
    %58 = arith.negf %57 : vector<2x64xf32>
    %59 = math.exp %58 : vector<2x64xf32>
    %cst_28 = arith.constant 1.000000e+00 : f32
    %60 = vector.broadcast %cst_28 : f32 to vector<2x64xf32>
    %61 = arith.addf %60, %59 : vector<2x64xf32>
    %62 = arith.divf %60, %61 : vector<2x64xf32>
    %63 = vector.extract_strided_slice %62 {offsets = [0, 0], sizes = [2, 32], strides = [1, 1]} : vector<2x64xf32> to vector<2x32xf32>
    %64 = vector.extract_strided_slice %62 {offsets = [0, 32], sizes = [2, 32], strides = [1, 1]} : vector<2x64xf32> to vector<2x32xf32>
    %65 = vector.extract_strided_slice %52 {offsets = [0, 64], sizes = [2, 32], strides = [1, 1]} : vector<2x96xf32> to vector<2x32xf32>
    %66 = arith.addf %65, %25 : vector<2x32xf32>
    %67 = vector.extract_strided_slice %54 {offsets = [0, 64], sizes = [2, 32], strides = [1, 1]} : vector<2x96xf32> to vector<2x32xf32>
    %68 = arith.mulf %63, %67 : vector<2x32xf32>
    %69 = arith.addf %66, %68 : vector<2x32xf32>
    %70 = math.tanh %69 : vector<2x32xf32>
    %cst_29 = arith.constant 1.000000e+00 : f32
    %71 = vector.broadcast %cst_29 : f32 to vector<2x32xf32>
    %72 = arith.subf %71, %64 : vector<2x32xf32>
    %73 = arith.mulf %72, %70 : vector<2x32xf32>
    %74 = arith.mulf %64, %27 : vector<2x32xf32>
    %75 = arith.addf %73, %74 : vector<2x32xf32>
    %76 = vector.extract_strided_slice %10 {offsets = [2, 0], sizes = [2, 96], strides = [1, 1]} : vector<16x96xf32> to vector<2x96xf32>
    %cst_30 = arith.constant dense<0.000000e+00> : vector<2x96xf32>
    %77 = tpu.matmul %51, %11, %cst_30 {dimension_numbers = #tpu.dot_dimension_numbers<[1], [0], [0], [1], [0, 0, 1, 1], [], []>} : vector<2x32xf32>, vector<32x96xf32>, vector<2x96xf32> -> vector<2x96xf32>
    %78 = arith.addf %77, %14 : vector<2x96xf32>
    %79 = vector.extract_strided_slice %76 {offsets = [0, 0], sizes = [2, 64], strides = [1, 1]} : vector<2x96xf32> to vector<2x64xf32>
    %80 = vector.extract_strided_slice %78 {offsets = [0, 0], sizes = [2, 64], strides = [1, 1]} : vector<2x96xf32> to vector<2x64xf32>
    %81 = arith.addf %79, %80 : vector<2x64xf32>
    %82 = arith.negf %81 : vector<2x64xf32>
    %83 = math.exp %82 : vector<2x64xf32>
    %cst_31 = arith.constant 1.000000e+00 : f32
    %84 = vector.broadcast %cst_31 : f32 to vector<2x64xf32>
    %85 = arith.addf %84, %83 : vector<2x64xf32>
    %86 = arith.divf %84, %85 : vector<2x64xf32>
    %87 = vector.extract_strided_slice %86 {offsets = [0, 0], sizes = [2, 32], strides = [1, 1]} : vector<2x64xf32> to vector<2x32xf32>
    %88 = vector.extract_strided_slice %86 {offsets = [0, 32], sizes = [2, 32], strides = [1, 1]} : vector<2x64xf32> to vector<2x32xf32>
    %89 = vector.extract_strided_slice %76 {offsets = [0, 64], sizes = [2, 32], strides = [1, 1]} : vector<2x96xf32> to vector<2x32xf32>
    %90 = arith.addf %89, %17 : vector<2x32xf32>
    %91 = vector.extract_strided_slice %78 {offsets = [0, 64], sizes = [2, 32], strides = [1, 1]} : vector<2x96xf32> to vector<2x32xf32>
    %92 = arith.mulf %87, %91 : vector<2x32xf32>
    %93 = arith.addf %90, %92 : vector<2x32xf32>
    %94 = math.tanh %93 : vector<2x32xf32>
    %cst_32 = arith.constant 1.000000e+00 : f32
    %95 = vector.broadcast %cst_32 : f32 to vector<2x32xf32>
    %96 = arith.subf %95, %88 : vector<2x32xf32>
    %97 = arith.mulf %96, %94 : vector<2x32xf32>
    %98 = arith.mulf %88, %51 : vector<2x32xf32>
    %99 = arith.addf %97, %98 : vector<2x32xf32>
    %cst_33 = arith.constant dense<0.000000e+00> : vector<2x96xf32>
    %100 = tpu.matmul %99, %18, %cst_33 {dimension_numbers = #tpu.dot_dimension_numbers<[1], [0], [0], [1], [0, 0, 1, 1], [], []>} : vector<2x32xf32>, vector<32x96xf32>, vector<2x96xf32> -> vector<2x96xf32>
    %cst_34 = arith.constant dense<0.000000e+00> : vector<2x96xf32>
    %101 = tpu.matmul %75, %19, %cst_34 {dimension_numbers = #tpu.dot_dimension_numbers<[1], [0], [0], [1], [0, 0, 1, 1], [], []>} : vector<2x32xf32>, vector<32x96xf32>, vector<2x96xf32> -> vector<2x96xf32>
    %102 = arith.addf %101, %22 : vector<2x96xf32>
    %103 = vector.extract_strided_slice %100 {offsets = [0, 0], sizes = [2, 64], strides = [1, 1]} : vector<2x96xf32> to vector<2x64xf32>
    %104 = vector.extract_strided_slice %102 {offsets = [0, 0], sizes = [2, 64], strides = [1, 1]} : vector<2x96xf32> to vector<2x64xf32>
    %105 = arith.addf %103, %104 : vector<2x64xf32>
    %106 = arith.negf %105 : vector<2x64xf32>
    %107 = math.exp %106 : vector<2x64xf32>
    %cst_35 = arith.constant 1.000000e+00 : f32
    %108 = vector.broadcast %cst_35 : f32 to vector<2x64xf32>
    %109 = arith.addf %108, %107 : vector<2x64xf32>
    %110 = arith.divf %108, %109 : vector<2x64xf32>
    %111 = vector.extract_strided_slice %110 {offsets = [0, 0], sizes = [2, 32], strides = [1, 1]} : vector<2x64xf32> to vector<2x32xf32>
    %112 = vector.extract_strided_slice %110 {offsets = [0, 32], sizes = [2, 32], strides = [1, 1]} : vector<2x64xf32> to vector<2x32xf32>
    %113 = vector.extract_strided_slice %100 {offsets = [0, 64], sizes = [2, 32], strides = [1, 1]} : vector<2x96xf32> to vector<2x32xf32>
    %114 = arith.addf %113, %25 : vector<2x32xf32>
    %115 = vector.extract_strided_slice %102 {offsets = [0, 64], sizes = [2, 32], strides = [1, 1]} : vector<2x96xf32> to vector<2x32xf32>
    %116 = arith.mulf %111, %115 : vector<2x32xf32>
    %117 = arith.addf %114, %116 : vector<2x32xf32>
    %118 = math.tanh %117 : vector<2x32xf32>
    %cst_36 = arith.constant 1.000000e+00 : f32
    %119 = vector.broadcast %cst_36 : f32 to vector<2x32xf32>
    %120 = arith.subf %119, %112 : vector<2x32xf32>
    %121 = arith.mulf %120, %118 : vector<2x32xf32>
    %122 = arith.mulf %112, %75 : vector<2x32xf32>
    %123 = arith.addf %121, %122 : vector<2x32xf32>
    %124 = vector.extract_strided_slice %10 {offsets = [4, 0], sizes = [2, 96], strides = [1, 1]} : vector<16x96xf32> to vector<2x96xf32>
    %cst_37 = arith.constant dense<0.000000e+00> : vector<2x96xf32>
    %125 = tpu.matmul %99, %11, %cst_37 {dimension_numbers = #tpu.dot_dimension_numbers<[1], [0], [0], [1], [0, 0, 1, 1], [], []>} : vector<2x32xf32>, vector<32x96xf32>, vector<2x96xf32> -> vector<2x96xf32>
    %126 = arith.addf %125, %14 : vector<2x96xf32>
    %127 = vector.extract_strided_slice %124 {offsets = [0, 0], sizes = [2, 64], strides = [1, 1]} : vector<2x96xf32> to vector<2x64xf32>
    %128 = vector.extract_strided_slice %126 {offsets = [0, 0], sizes = [2, 64], strides = [1, 1]} : vector<2x96xf32> to vector<2x64xf32>
    %129 = arith.addf %127, %128 : vector<2x64xf32>
    %130 = arith.negf %129 : vector<2x64xf32>
    %131 = math.exp %130 : vector<2x64xf32>
    %cst_38 = arith.constant 1.000000e+00 : f32
    %132 = vector.broadcast %cst_38 : f32 to vector<2x64xf32>
    %133 = arith.addf %132, %131 : vector<2x64xf32>
    %134 = arith.divf %132, %133 : vector<2x64xf32>
    %135 = vector.extract_strided_slice %134 {offsets = [0, 0], sizes = [2, 32], strides = [1, 1]} : vector<2x64xf32> to vector<2x32xf32>
    %136 = vector.extract_strided_slice %134 {offsets = [0, 32], sizes = [2, 32], strides = [1, 1]} : vector<2x64xf32> to vector<2x32xf32>
    %137 = vector.extract_strided_slice %124 {offsets = [0, 64], sizes = [2, 32], strides = [1, 1]} : vector<2x96xf32> to vector<2x32xf32>
    %138 = arith.addf %137, %17 : vector<2x32xf32>
    %139 = vector.extract_strided_slice %126 {offsets = [0, 64], sizes = [2, 32], strides = [1, 1]} : vector<2x96xf32> to vector<2x32xf32>
    %140 = arith.mulf %135, %139 : vector<2x32xf32>
    %141 = arith.addf %138, %140 : vector<2x32xf32>
    %142 = math.tanh %141 : vector<2x32xf32>
    %cst_39 = arith.constant 1.000000e+00 : f32
    %143 = vector.broadcast %cst_39 : f32 to vector<2x32xf32>
    %144 = arith.subf %143, %136 : vector<2x32xf32>
    %145 = arith.mulf %144, %142 : vector<2x32xf32>
    %146 = arith.mulf %136, %99 : vector<2x32xf32>
    %147 = arith.addf %145, %146 : vector<2x32xf32>
    %cst_40 = arith.constant dense<0.000000e+00> : vector<2x96xf32>
    %148 = tpu.matmul %147, %18, %cst_40 {dimension_numbers = #tpu.dot_dimension_numbers<[1], [0], [0], [1], [0, 0, 1, 1], [], []>} : vector<2x32xf32>, vector<32x96xf32>, vector<2x96xf32> -> vector<2x96xf32>
    %cst_41 = arith.constant dense<0.000000e+00> : vector<2x96xf32>
    %149 = tpu.matmul %123, %19, %cst_41 {dimension_numbers = #tpu.dot_dimension_numbers<[1], [0], [0], [1], [0, 0, 1, 1], [], []>} : vector<2x32xf32>, vector<32x96xf32>, vector<2x96xf32> -> vector<2x96xf32>
    %150 = arith.addf %149, %22 : vector<2x96xf32>
    %151 = vector.extract_strided_slice %148 {offsets = [0, 0], sizes = [2, 64], strides = [1, 1]} : vector<2x96xf32> to vector<2x64xf32>
    %152 = vector.extract_strided_slice %150 {offsets = [0, 0], sizes = [2, 64], strides = [1, 1]} : vector<2x96xf32> to vector<2x64xf32>
    %153 = arith.addf %151, %152 : vector<2x64xf32>
    %154 = arith.negf %153 : vector<2x64xf32>
    %155 = math.exp %154 : vector<2x64xf32>
    %cst_42 = arith.constant 1.000000e+00 : f32
    %156 = vector.broadcast %cst_42 : f32 to vector<2x64xf32>
    %157 = arith.addf %156, %155 : vector<2x64xf32>
    %158 = arith.divf %156, %157 : vector<2x64xf32>
    %159 = vector.extract_strided_slice %158 {offsets = [0, 0], sizes = [2, 32], strides = [1, 1]} : vector<2x64xf32> to vector<2x32xf32>
    %160 = vector.extract_strided_slice %158 {offsets = [0, 32], sizes = [2, 32], strides = [1, 1]} : vector<2x64xf32> to vector<2x32xf32>
    %161 = vector.extract_strided_slice %148 {offsets = [0, 64], sizes = [2, 32], strides = [1, 1]} : vector<2x96xf32> to vector<2x32xf32>
    %162 = arith.addf %161, %25 : vector<2x32xf32>
    %163 = vector.extract_strided_slice %150 {offsets = [0, 64], sizes = [2, 32], strides = [1, 1]} : vector<2x96xf32> to vector<2x32xf32>
    %164 = arith.mulf %159, %163 : vector<2x32xf32>
    %165 = arith.addf %162, %164 : vector<2x32xf32>
    %166 = math.tanh %165 : vector<2x32xf32>
    %cst_43 = arith.constant 1.000000e+00 : f32
    %167 = vector.broadcast %cst_43 : f32 to vector<2x32xf32>
    %168 = arith.subf %167, %160 : vector<2x32xf32>
    %169 = arith.mulf %168, %166 : vector<2x32xf32>
    %170 = arith.mulf %160, %123 : vector<2x32xf32>
    %171 = arith.addf %169, %170 : vector<2x32xf32>
    %172 = vector.extract_strided_slice %10 {offsets = [6, 0], sizes = [2, 96], strides = [1, 1]} : vector<16x96xf32> to vector<2x96xf32>
    %cst_44 = arith.constant dense<0.000000e+00> : vector<2x96xf32>
    %173 = tpu.matmul %147, %11, %cst_44 {dimension_numbers = #tpu.dot_dimension_numbers<[1], [0], [0], [1], [0, 0, 1, 1], [], []>} : vector<2x32xf32>, vector<32x96xf32>, vector<2x96xf32> -> vector<2x96xf32>
    %174 = arith.addf %173, %14 : vector<2x96xf32>
    %175 = vector.extract_strided_slice %172 {offsets = [0, 0], sizes = [2, 64], strides = [1, 1]} : vector<2x96xf32> to vector<2x64xf32>
    %176 = vector.extract_strided_slice %174 {offsets = [0, 0], sizes = [2, 64], strides = [1, 1]} : vector<2x96xf32> to vector<2x64xf32>
    %177 = arith.addf %175, %176 : vector<2x64xf32>
    %178 = arith.negf %177 : vector<2x64xf32>
    %179 = math.exp %178 : vector<2x64xf32>
    %cst_45 = arith.constant 1.000000e+00 : f32
    %180 = vector.broadcast %cst_45 : f32 to vector<2x64xf32>
    %181 = arith.addf %180, %179 : vector<2x64xf32>
    %182 = arith.divf %180, %181 : vector<2x64xf32>
    %183 = vector.extract_strided_slice %182 {offsets = [0, 0], sizes = [2, 32], strides = [1, 1]} : vector<2x64xf32> to vector<2x32xf32>
    %184 = vector.extract_strided_slice %182 {offsets = [0, 32], sizes = [2, 32], strides = [1, 1]} : vector<2x64xf32> to vector<2x32xf32>
    %185 = vector.extract_strided_slice %172 {offsets = [0, 64], sizes = [2, 32], strides = [1, 1]} : vector<2x96xf32> to vector<2x32xf32>
    %186 = arith.addf %185, %17 : vector<2x32xf32>
    %187 = vector.extract_strided_slice %174 {offsets = [0, 64], sizes = [2, 32], strides = [1, 1]} : vector<2x96xf32> to vector<2x32xf32>
    %188 = arith.mulf %183, %187 : vector<2x32xf32>
    %189 = arith.addf %186, %188 : vector<2x32xf32>
    %190 = math.tanh %189 : vector<2x32xf32>
    %cst_46 = arith.constant 1.000000e+00 : f32
    %191 = vector.broadcast %cst_46 : f32 to vector<2x32xf32>
    %192 = arith.subf %191, %184 : vector<2x32xf32>
    %193 = arith.mulf %192, %190 : vector<2x32xf32>
    %194 = arith.mulf %184, %147 : vector<2x32xf32>
    %195 = arith.addf %193, %194 : vector<2x32xf32>
    %cst_47 = arith.constant dense<0.000000e+00> : vector<2x96xf32>
    %196 = tpu.matmul %195, %18, %cst_47 {dimension_numbers = #tpu.dot_dimension_numbers<[1], [0], [0], [1], [0, 0, 1, 1], [], []>} : vector<2x32xf32>, vector<32x96xf32>, vector<2x96xf32> -> vector<2x96xf32>
    %cst_48 = arith.constant dense<0.000000e+00> : vector<2x96xf32>
    %197 = tpu.matmul %171, %19, %cst_48 {dimension_numbers = #tpu.dot_dimension_numbers<[1], [0], [0], [1], [0, 0, 1, 1], [], []>} : vector<2x32xf32>, vector<32x96xf32>, vector<2x96xf32> -> vector<2x96xf32>
    %198 = arith.addf %197, %22 : vector<2x96xf32>
    %199 = vector.extract_strided_slice %196 {offsets = [0, 0], sizes = [2, 64], strides = [1, 1]} : vector<2x96xf32> to vector<2x64xf32>
    %200 = vector.extract_strided_slice %198 {offsets = [0, 0], sizes = [2, 64], strides = [1, 1]} : vector<2x96xf32> to vector<2x64xf32>
    %201 = arith.addf %199, %200 : vector<2x64xf32>
    %202 = arith.negf %201 : vector<2x64xf32>
    %203 = math.exp %202 : vector<2x64xf32>
    %cst_49 = arith.constant 1.000000e+00 : f32
    %204 = vector.broadcast %cst_49 : f32 to vector<2x64xf32>
    %205 = arith.addf %204, %203 : vector<2x64xf32>
    %206 = arith.divf %204, %205 : vector<2x64xf32>
    %207 = vector.extract_strided_slice %206 {offsets = [0, 0], sizes = [2, 32], strides = [1, 1]} : vector<2x64xf32> to vector<2x32xf32>
    %208 = vector.extract_strided_slice %206 {offsets = [0, 32], sizes = [2, 32], strides = [1, 1]} : vector<2x64xf32> to vector<2x32xf32>
    %209 = vector.extract_strided_slice %196 {offsets = [0, 64], sizes = [2, 32], strides = [1, 1]} : vector<2x96xf32> to vector<2x32xf32>
    %210 = arith.addf %209, %25 : vector<2x32xf32>
    %211 = vector.extract_strided_slice %198 {offsets = [0, 64], sizes = [2, 32], strides = [1, 1]} : vector<2x96xf32> to vector<2x32xf32>
    %212 = arith.mulf %207, %211 : vector<2x32xf32>
    %213 = arith.addf %210, %212 : vector<2x32xf32>
    %214 = math.tanh %213 : vector<2x32xf32>
    %cst_50 = arith.constant 1.000000e+00 : f32
    %215 = vector.broadcast %cst_50 : f32 to vector<2x32xf32>
    %216 = arith.subf %215, %208 : vector<2x32xf32>
    %217 = arith.mulf %216, %214 : vector<2x32xf32>
    %218 = arith.mulf %208, %171 : vector<2x32xf32>
    %219 = arith.addf %217, %218 : vector<2x32xf32>
    %220 = vector.extract_strided_slice %10 {offsets = [8, 0], sizes = [2, 96], strides = [1, 1]} : vector<16x96xf32> to vector<2x96xf32>
    %cst_51 = arith.constant dense<0.000000e+00> : vector<2x96xf32>
    %221 = tpu.matmul %195, %11, %cst_51 {dimension_numbers = #tpu.dot_dimension_numbers<[1], [0], [0], [1], [0, 0, 1, 1], [], []>} : vector<2x32xf32>, vector<32x96xf32>, vector<2x96xf32> -> vector<2x96xf32>
    %222 = arith.addf %221, %14 : vector<2x96xf32>
    %223 = vector.extract_strided_slice %220 {offsets = [0, 0], sizes = [2, 64], strides = [1, 1]} : vector<2x96xf32> to vector<2x64xf32>
    %224 = vector.extract_strided_slice %222 {offsets = [0, 0], sizes = [2, 64], strides = [1, 1]} : vector<2x96xf32> to vector<2x64xf32>
    %225 = arith.addf %223, %224 : vector<2x64xf32>
    %226 = arith.negf %225 : vector<2x64xf32>
    %227 = math.exp %226 : vector<2x64xf32>
    %cst_52 = arith.constant 1.000000e+00 : f32
    %228 = vector.broadcast %cst_52 : f32 to vector<2x64xf32>
    %229 = arith.addf %228, %227 : vector<2x64xf32>
    %230 = arith.divf %228, %229 : vector<2x64xf32>
    %231 = vector.extract_strided_slice %230 {offsets = [0, 0], sizes = [2, 32], strides = [1, 1]} : vector<2x64xf32> to vector<2x32xf32>
    %232 = vector.extract_strided_slice %230 {offsets = [0, 32], sizes = [2, 32], strides = [1, 1]} : vector<2x64xf32> to vector<2x32xf32>
    %233 = vector.extract_strided_slice %220 {offsets = [0, 64], sizes = [2, 32], strides = [1, 1]} : vector<2x96xf32> to vector<2x32xf32>
    %234 = arith.addf %233, %17 : vector<2x32xf32>
    %235 = vector.extract_strided_slice %222 {offsets = [0, 64], sizes = [2, 32], strides = [1, 1]} : vector<2x96xf32> to vector<2x32xf32>
    %236 = arith.mulf %231, %235 : vector<2x32xf32>
    %237 = arith.addf %234, %236 : vector<2x32xf32>
    %238 = math.tanh %237 : vector<2x32xf32>
    %cst_53 = arith.constant 1.000000e+00 : f32
    %239 = vector.broadcast %cst_53 : f32 to vector<2x32xf32>
    %240 = arith.subf %239, %232 : vector<2x32xf32>
    %241 = arith.mulf %240, %238 : vector<2x32xf32>
    %242 = arith.mulf %232, %195 : vector<2x32xf32>
    %243 = arith.addf %241, %242 : vector<2x32xf32>
    %cst_54 = arith.constant dense<0.000000e+00> : vector<2x96xf32>
    %244 = tpu.matmul %243, %18, %cst_54 {dimension_numbers = #tpu.dot_dimension_numbers<[1], [0], [0], [1], [0, 0, 1, 1], [], []>} : vector<2x32xf32>, vector<32x96xf32>, vector<2x96xf32> -> vector<2x96xf32>
    %cst_55 = arith.constant dense<0.000000e+00> : vector<2x96xf32>
    %245 = tpu.matmul %219, %19, %cst_55 {dimension_numbers = #tpu.dot_dimension_numbers<[1], [0], [0], [1], [0, 0, 1, 1], [], []>} : vector<2x32xf32>, vector<32x96xf32>, vector<2x96xf32> -> vector<2x96xf32>
    %246 = arith.addf %245, %22 : vector<2x96xf32>
    %247 = vector.extract_strided_slice %244 {offsets = [0, 0], sizes = [2, 64], strides = [1, 1]} : vector<2x96xf32> to vector<2x64xf32>
    %248 = vector.extract_strided_slice %246 {offsets = [0, 0], sizes = [2, 64], strides = [1, 1]} : vector<2x96xf32> to vector<2x64xf32>
    %249 = arith.addf %247, %248 : vector<2x64xf32>
    %250 = arith.negf %249 : vector<2x64xf32>
    %251 = math.exp %250 : vector<2x64xf32>
    %cst_56 = arith.constant 1.000000e+00 : f32
    %252 = vector.broadcast %cst_56 : f32 to vector<2x64xf32>
    %253 = arith.addf %252, %251 : vector<2x64xf32>
    %254 = arith.divf %252, %253 : vector<2x64xf32>
    %255 = vector.extract_strided_slice %254 {offsets = [0, 0], sizes = [2, 32], strides = [1, 1]} : vector<2x64xf32> to vector<2x32xf32>
    %256 = vector.extract_strided_slice %254 {offsets = [0, 32], sizes = [2, 32], strides = [1, 1]} : vector<2x64xf32> to vector<2x32xf32>
    %257 = vector.extract_strided_slice %244 {offsets = [0, 64], sizes = [2, 32], strides = [1, 1]} : vector<2x96xf32> to vector<2x32xf32>
    %258 = arith.addf %257, %25 : vector<2x32xf32>
    %259 = vector.extract_strided_slice %246 {offsets = [0, 64], sizes = [2, 32], strides = [1, 1]} : vector<2x96xf32> to vector<2x32xf32>
    %260 = arith.mulf %255, %259 : vector<2x32xf32>
    %261 = arith.addf %258, %260 : vector<2x32xf32>
    %262 = math.tanh %261 : vector<2x32xf32>
    %cst_57 = arith.constant 1.000000e+00 : f32
    %263 = vector.broadcast %cst_57 : f32 to vector<2x32xf32>
    %264 = arith.subf %263, %256 : vector<2x32xf32>
    %265 = arith.mulf %264, %262 : vector<2x32xf32>
    %266 = arith.mulf %256, %219 : vector<2x32xf32>
    %267 = arith.addf %265, %266 : vector<2x32xf32>
    %268 = vector.extract_strided_slice %10 {offsets = [10, 0], sizes = [2, 96], strides = [1, 1]} : vector<16x96xf32> to vector<2x96xf32>
    %cst_58 = arith.constant dense<0.000000e+00> : vector<2x96xf32>
    %269 = tpu.matmul %243, %11, %cst_58 {dimension_numbers = #tpu.dot_dimension_numbers<[1], [0], [0], [1], [0, 0, 1, 1], [], []>} : vector<2x32xf32>, vector<32x96xf32>, vector<2x96xf32> -> vector<2x96xf32>
    %270 = arith.addf %269, %14 : vector<2x96xf32>
    %271 = vector.extract_strided_slice %268 {offsets = [0, 0], sizes = [2, 64], strides = [1, 1]} : vector<2x96xf32> to vector<2x64xf32>
    %272 = vector.extract_strided_slice %270 {offsets = [0, 0], sizes = [2, 64], strides = [1, 1]} : vector<2x96xf32> to vector<2x64xf32>
    %273 = arith.addf %271, %272 : vector<2x64xf32>
    %274 = arith.negf %273 : vector<2x64xf32>
    %275 = math.exp %274 : vector<2x64xf32>
    %cst_59 = arith.constant 1.000000e+00 : f32
    %276 = vector.broadcast %cst_59 : f32 to vector<2x64xf32>
    %277 = arith.addf %276, %275 : vector<2x64xf32>
    %278 = arith.divf %276, %277 : vector<2x64xf32>
    %279 = vector.extract_strided_slice %278 {offsets = [0, 0], sizes = [2, 32], strides = [1, 1]} : vector<2x64xf32> to vector<2x32xf32>
    %280 = vector.extract_strided_slice %278 {offsets = [0, 32], sizes = [2, 32], strides = [1, 1]} : vector<2x64xf32> to vector<2x32xf32>
    %281 = vector.extract_strided_slice %268 {offsets = [0, 64], sizes = [2, 32], strides = [1, 1]} : vector<2x96xf32> to vector<2x32xf32>
    %282 = arith.addf %281, %17 : vector<2x32xf32>
    %283 = vector.extract_strided_slice %270 {offsets = [0, 64], sizes = [2, 32], strides = [1, 1]} : vector<2x96xf32> to vector<2x32xf32>
    %284 = arith.mulf %279, %283 : vector<2x32xf32>
    %285 = arith.addf %282, %284 : vector<2x32xf32>
    %286 = math.tanh %285 : vector<2x32xf32>
    %cst_60 = arith.constant 1.000000e+00 : f32
    %287 = vector.broadcast %cst_60 : f32 to vector<2x32xf32>
    %288 = arith.subf %287, %280 : vector<2x32xf32>
    %289 = arith.mulf %288, %286 : vector<2x32xf32>
    %290 = arith.mulf %280, %243 : vector<2x32xf32>
    %291 = arith.addf %289, %290 : vector<2x32xf32>
    %cst_61 = arith.constant dense<0.000000e+00> : vector<2x96xf32>
    %292 = tpu.matmul %291, %18, %cst_61 {dimension_numbers = #tpu.dot_dimension_numbers<[1], [0], [0], [1], [0, 0, 1, 1], [], []>} : vector<2x32xf32>, vector<32x96xf32>, vector<2x96xf32> -> vector<2x96xf32>
    %cst_62 = arith.constant dense<0.000000e+00> : vector<2x96xf32>
    %293 = tpu.matmul %267, %19, %cst_62 {dimension_numbers = #tpu.dot_dimension_numbers<[1], [0], [0], [1], [0, 0, 1, 1], [], []>} : vector<2x32xf32>, vector<32x96xf32>, vector<2x96xf32> -> vector<2x96xf32>
    %294 = arith.addf %293, %22 : vector<2x96xf32>
    %295 = vector.extract_strided_slice %292 {offsets = [0, 0], sizes = [2, 64], strides = [1, 1]} : vector<2x96xf32> to vector<2x64xf32>
    %296 = vector.extract_strided_slice %294 {offsets = [0, 0], sizes = [2, 64], strides = [1, 1]} : vector<2x96xf32> to vector<2x64xf32>
    %297 = arith.addf %295, %296 : vector<2x64xf32>
    %298 = arith.negf %297 : vector<2x64xf32>
    %299 = math.exp %298 : vector<2x64xf32>
    %cst_63 = arith.constant 1.000000e+00 : f32
    %300 = vector.broadcast %cst_63 : f32 to vector<2x64xf32>
    %301 = arith.addf %300, %299 : vector<2x64xf32>
    %302 = arith.divf %300, %301 : vector<2x64xf32>
    %303 = vector.extract_strided_slice %302 {offsets = [0, 0], sizes = [2, 32], strides = [1, 1]} : vector<2x64xf32> to vector<2x32xf32>
    %304 = vector.extract_strided_slice %302 {offsets = [0, 32], sizes = [2, 32], strides = [1, 1]} : vector<2x64xf32> to vector<2x32xf32>
    %305 = vector.extract_strided_slice %292 {offsets = [0, 64], sizes = [2, 32], strides = [1, 1]} : vector<2x96xf32> to vector<2x32xf32>
    %306 = arith.addf %305, %25 : vector<2x32xf32>
    %307 = vector.extract_strided_slice %294 {offsets = [0, 64], sizes = [2, 32], strides = [1, 1]} : vector<2x96xf32> to vector<2x32xf32>
    %308 = arith.mulf %303, %307 : vector<2x32xf32>
    %309 = arith.addf %306, %308 : vector<2x32xf32>
    %310 = math.tanh %309 : vector<2x32xf32>
    %cst_64 = arith.constant 1.000000e+00 : f32
    %311 = vector.broadcast %cst_64 : f32 to vector<2x32xf32>
    %312 = arith.subf %311, %304 : vector<2x32xf32>
    %313 = arith.mulf %312, %310 : vector<2x32xf32>
    %314 = arith.mulf %304, %267 : vector<2x32xf32>
    %315 = arith.addf %313, %314 : vector<2x32xf32>
    %316 = vector.extract_strided_slice %10 {offsets = [12, 0], sizes = [2, 96], strides = [1, 1]} : vector<16x96xf32> to vector<2x96xf32>
    %cst_65 = arith.constant dense<0.000000e+00> : vector<2x96xf32>
    %317 = tpu.matmul %291, %11, %cst_65 {dimension_numbers = #tpu.dot_dimension_numbers<[1], [0], [0], [1], [0, 0, 1, 1], [], []>} : vector<2x32xf32>, vector<32x96xf32>, vector<2x96xf32> -> vector<2x96xf32>
    %318 = arith.addf %317, %14 : vector<2x96xf32>
    %319 = vector.extract_strided_slice %316 {offsets = [0, 0], sizes = [2, 64], strides = [1, 1]} : vector<2x96xf32> to vector<2x64xf32>
    %320 = vector.extract_strided_slice %318 {offsets = [0, 0], sizes = [2, 64], strides = [1, 1]} : vector<2x96xf32> to vector<2x64xf32>
    %321 = arith.addf %319, %320 : vector<2x64xf32>
    %322 = arith.negf %321 : vector<2x64xf32>
    %323 = math.exp %322 : vector<2x64xf32>
    %cst_66 = arith.constant 1.000000e+00 : f32
    %324 = vector.broadcast %cst_66 : f32 to vector<2x64xf32>
    %325 = arith.addf %324, %323 : vector<2x64xf32>
    %326 = arith.divf %324, %325 : vector<2x64xf32>
    %327 = vector.extract_strided_slice %326 {offsets = [0, 0], sizes = [2, 32], strides = [1, 1]} : vector<2x64xf32> to vector<2x32xf32>
    %328 = vector.extract_strided_slice %326 {offsets = [0, 32], sizes = [2, 32], strides = [1, 1]} : vector<2x64xf32> to vector<2x32xf32>
    %329 = vector.extract_strided_slice %316 {offsets = [0, 64], sizes = [2, 32], strides = [1, 1]} : vector<2x96xf32> to vector<2x32xf32>
    %330 = arith.addf %329, %17 : vector<2x32xf32>
    %331 = vector.extract_strided_slice %318 {offsets = [0, 64], sizes = [2, 32], strides = [1, 1]} : vector<2x96xf32> to vector<2x32xf32>
    %332 = arith.mulf %327, %331 : vector<2x32xf32>
    %333 = arith.addf %330, %332 : vector<2x32xf32>
    %334 = math.tanh %333 : vector<2x32xf32>
    %cst_67 = arith.constant 1.000000e+00 : f32
    %335 = vector.broadcast %cst_67 : f32 to vector<2x32xf32>
    %336 = arith.subf %335, %328 : vector<2x32xf32>
    %337 = arith.mulf %336, %334 : vector<2x32xf32>
    %338 = arith.mulf %328, %291 : vector<2x32xf32>
    %339 = arith.addf %337, %338 : vector<2x32xf32>
    %cst_68 = arith.constant dense<0.000000e+00> : vector<2x96xf32>
    %340 = tpu.matmul %339, %18, %cst_68 {dimension_numbers = #tpu.dot_dimension_numbers<[1], [0], [0], [1], [0, 0, 1, 1], [], []>} : vector<2x32xf32>, vector<32x96xf32>, vector<2x96xf32> -> vector<2x96xf32>
    %cst_69 = arith.constant dense<0.000000e+00> : vector<2x96xf32>
    %341 = tpu.matmul %315, %19, %cst_69 {dimension_numbers = #tpu.dot_dimension_numbers<[1], [0], [0], [1], [0, 0, 1, 1], [], []>} : vector<2x32xf32>, vector<32x96xf32>, vector<2x96xf32> -> vector<2x96xf32>
    %342 = arith.addf %341, %22 : vector<2x96xf32>
    %343 = vector.extract_strided_slice %340 {offsets = [0, 0], sizes = [2, 64], strides = [1, 1]} : vector<2x96xf32> to vector<2x64xf32>
    %344 = vector.extract_strided_slice %342 {offsets = [0, 0], sizes = [2, 64], strides = [1, 1]} : vector<2x96xf32> to vector<2x64xf32>
    %345 = arith.addf %343, %344 : vector<2x64xf32>
    %346 = arith.negf %345 : vector<2x64xf32>
    %347 = math.exp %346 : vector<2x64xf32>
    %cst_70 = arith.constant 1.000000e+00 : f32
    %348 = vector.broadcast %cst_70 : f32 to vector<2x64xf32>
    %349 = arith.addf %348, %347 : vector<2x64xf32>
    %350 = arith.divf %348, %349 : vector<2x64xf32>
    %351 = vector.extract_strided_slice %350 {offsets = [0, 0], sizes = [2, 32], strides = [1, 1]} : vector<2x64xf32> to vector<2x32xf32>
    %352 = vector.extract_strided_slice %350 {offsets = [0, 32], sizes = [2, 32], strides = [1, 1]} : vector<2x64xf32> to vector<2x32xf32>
    %353 = vector.extract_strided_slice %340 {offsets = [0, 64], sizes = [2, 32], strides = [1, 1]} : vector<2x96xf32> to vector<2x32xf32>
    %354 = arith.addf %353, %25 : vector<2x32xf32>
    %355 = vector.extract_strided_slice %342 {offsets = [0, 64], sizes = [2, 32], strides = [1, 1]} : vector<2x96xf32> to vector<2x32xf32>
    %356 = arith.mulf %351, %355 : vector<2x32xf32>
    %357 = arith.addf %354, %356 : vector<2x32xf32>
    %358 = math.tanh %357 : vector<2x32xf32>
    %cst_71 = arith.constant 1.000000e+00 : f32
    %359 = vector.broadcast %cst_71 : f32 to vector<2x32xf32>
    %360 = arith.subf %359, %352 : vector<2x32xf32>
    %361 = arith.mulf %360, %358 : vector<2x32xf32>
    %362 = arith.mulf %352, %315 : vector<2x32xf32>
    %363 = arith.addf %361, %362 : vector<2x32xf32>
    %364 = vector.extract_strided_slice %10 {offsets = [14, 0], sizes = [2, 96], strides = [1, 1]} : vector<16x96xf32> to vector<2x96xf32>
    %cst_72 = arith.constant dense<0.000000e+00> : vector<2x96xf32>
    %365 = tpu.matmul %339, %11, %cst_72 {dimension_numbers = #tpu.dot_dimension_numbers<[1], [0], [0], [1], [0, 0, 1, 1], [], []>} : vector<2x32xf32>, vector<32x96xf32>, vector<2x96xf32> -> vector<2x96xf32>
    %366 = arith.addf %365, %14 : vector<2x96xf32>
    %367 = vector.extract_strided_slice %364 {offsets = [0, 0], sizes = [2, 64], strides = [1, 1]} : vector<2x96xf32> to vector<2x64xf32>
    %368 = vector.extract_strided_slice %366 {offsets = [0, 0], sizes = [2, 64], strides = [1, 1]} : vector<2x96xf32> to vector<2x64xf32>
    %369 = arith.addf %367, %368 : vector<2x64xf32>
    %370 = arith.negf %369 : vector<2x64xf32>
    %371 = math.exp %370 : vector<2x64xf32>
    %cst_73 = arith.constant 1.000000e+00 : f32
    %372 = vector.broadcast %cst_73 : f32 to vector<2x64xf32>
    %373 = arith.addf %372, %371 : vector<2x64xf32>
    %374 = arith.divf %372, %373 : vector<2x64xf32>
    %375 = vector.extract_strided_slice %374 {offsets = [0, 0], sizes = [2, 32], strides = [1, 1]} : vector<2x64xf32> to vector<2x32xf32>
    %376 = vector.extract_strided_slice %374 {offsets = [0, 32], sizes = [2, 32], strides = [1, 1]} : vector<2x64xf32> to vector<2x32xf32>
    %377 = vector.extract_strided_slice %364 {offsets = [0, 64], sizes = [2, 32], strides = [1, 1]} : vector<2x96xf32> to vector<2x32xf32>
    %378 = arith.addf %377, %17 : vector<2x32xf32>
    %379 = vector.extract_strided_slice %366 {offsets = [0, 64], sizes = [2, 32], strides = [1, 1]} : vector<2x96xf32> to vector<2x32xf32>
    %380 = arith.mulf %375, %379 : vector<2x32xf32>
    %381 = arith.addf %378, %380 : vector<2x32xf32>
    %382 = math.tanh %381 : vector<2x32xf32>
    %cst_74 = arith.constant 1.000000e+00 : f32
    %383 = vector.broadcast %cst_74 : f32 to vector<2x32xf32>
    %384 = arith.subf %383, %376 : vector<2x32xf32>
    %385 = arith.mulf %384, %382 : vector<2x32xf32>
    %386 = arith.mulf %376, %339 : vector<2x32xf32>
    %387 = arith.addf %385, %386 : vector<2x32xf32>
    %cst_75 = arith.constant dense<0.000000e+00> : vector<2x96xf32>
    %388 = tpu.matmul %387, %18, %cst_75 {dimension_numbers = #tpu.dot_dimension_numbers<[1], [0], [0], [1], [0, 0, 1, 1], [], []>} : vector<2x32xf32>, vector<32x96xf32>, vector<2x96xf32> -> vector<2x96xf32>
    %cst_76 = arith.constant dense<0.000000e+00> : vector<2x96xf32>
    %389 = tpu.matmul %363, %19, %cst_76 {dimension_numbers = #tpu.dot_dimension_numbers<[1], [0], [0], [1], [0, 0, 1, 1], [], []>} : vector<2x32xf32>, vector<32x96xf32>, vector<2x96xf32> -> vector<2x96xf32>
    %390 = arith.addf %389, %22 : vector<2x96xf32>
    %391 = vector.extract_strided_slice %388 {offsets = [0, 0], sizes = [2, 64], strides = [1, 1]} : vector<2x96xf32> to vector<2x64xf32>
    %392 = vector.extract_strided_slice %390 {offsets = [0, 0], sizes = [2, 64], strides = [1, 1]} : vector<2x96xf32> to vector<2x64xf32>
    %393 = arith.addf %391, %392 : vector<2x64xf32>
    %394 = arith.negf %393 : vector<2x64xf32>
    %395 = math.exp %394 : vector<2x64xf32>
    %cst_77 = arith.constant 1.000000e+00 : f32
    %396 = vector.broadcast %cst_77 : f32 to vector<2x64xf32>
    %397 = arith.addf %396, %395 : vector<2x64xf32>
    %398 = arith.divf %396, %397 : vector<2x64xf32>
    %399 = vector.extract_strided_slice %398 {offsets = [0, 0], sizes = [2, 32], strides = [1, 1]} : vector<2x64xf32> to vector<2x32xf32>
    %400 = vector.extract_strided_slice %398 {offsets = [0, 32], sizes = [2, 32], strides = [1, 1]} : vector<2x64xf32> to vector<2x32xf32>
    %401 = vector.extract_strided_slice %388 {offsets = [0, 64], sizes = [2, 32], strides = [1, 1]} : vector<2x96xf32> to vector<2x32xf32>
    %402 = arith.addf %401, %25 : vector<2x32xf32>
    %403 = vector.extract_strided_slice %390 {offsets = [0, 64], sizes = [2, 32], strides = [1, 1]} : vector<2x96xf32> to vector<2x32xf32>
    %404 = arith.mulf %399, %403 : vector<2x32xf32>
    %405 = arith.addf %402, %404 : vector<2x32xf32>
    %406 = math.tanh %405 : vector<2x32xf32>
    %cst_78 = arith.constant 1.000000e+00 : f32
    %407 = vector.broadcast %cst_78 : f32 to vector<2x32xf32>
    %408 = arith.subf %407, %400 : vector<2x32xf32>
    %409 = arith.mulf %408, %406 : vector<2x32xf32>
    %410 = arith.mulf %400, %363 : vector<2x32xf32>
    %411 = arith.addf %409, %410 : vector<2x32xf32>
    %412 = tpu.concatenate %75, %123, %171, %219, %267, %315, %363, %411 in 0 : vector<2x32xf32>, vector<2x32xf32>, vector<2x32xf32>, vector<2x32xf32>, vector<2x32xf32>, vector<2x32xf32>, vector<2x32xf32>, vector<2x32xf32> -> vector<16x32xf32>
    %c0_79 = arith.constant 0 : index
    %c0_80 = arith.constant 0 : index
    %413 = vector.load %arg11[%c0_79, %c0_80] : memref<32x32xf32, #tpu.memory_space<vmem>>, vector<32x32xf32>
    %cst_81 = arith.constant dense<0.000000e+00> : vector<16x32xf32>
    %414 = tpu.matmul %412, %413, %cst_81 {dimension_numbers = #tpu.dot_dimension_numbers<[1], [0], [0], [1], [0, 0, 1, 1], [], []>} : vector<16x32xf32>, vector<32x32xf32>, vector<16x32xf32> -> vector<16x32xf32>
    %c0_82 = arith.constant 0 : index
    %c0_83 = arith.constant 0 : index
    %415 = vector.load %arg12[%c0_82, %c0_83] : memref<1x32xf32, #tpu.memory_space<vmem>>, vector<1x32xf32>
    %416 = vector.broadcast %415 : vector<1x32xf32> to vector<16x32xf32>
    %417 = arith.addf %414, %416 : vector<16x32xf32>
    %cst_84 = arith.constant 0.000000e+00 : f32
    %418 = vector.broadcast %cst_84 : f32 to vector<16x32xf32>
    %419 = arith.maximumf %417, %418 : vector<16x32xf32>
    %c0_85 = arith.constant 0 : index
    %c0_86 = arith.constant 0 : index
    %420 = vector.load %arg13[%c0_85, %c0_86] : memref<1x32xf32, #tpu.memory_space<vmem>>, vector<1x32xf32>
    %421 = vector.broadcast %420 : vector<1x32xf32> to vector<16x32xf32>
    %422 = arith.mulf %419, %421 : vector<16x32xf32>
    %cst_87 = arith.constant dense<0.000000e+00> : vector<16xf32>
    %423 = vector.multi_reduction <add>, %422, %cst_87 [1] : vector<16x32xf32> to vector<16xf32>
    %424 = vector.shape_cast %423 : vector<16xf32> to vector<16x1xf32>
    %c0_88 = arith.constant 0 : index
    %c0_89 = arith.constant 0 : index
    %425 = vector.load %arg14[%c0_88, %c0_89] : memref<1x1xf32, #tpu.memory_space<vmem>>, vector<1x1xf32>
    %426 = vector.broadcast %425 : vector<1x1xf32> to vector<16x1xf32>
    %427 = arith.addf %424, %426 : vector<16x1xf32>
    %428 = arith.negf %427 : vector<16x1xf32>
    %429 = math.exp %428 : vector<16x1xf32>
    %cst_90 = arith.constant 1.000000e+00 : f32
    %430 = vector.broadcast %cst_90 : f32 to vector<16x1xf32>
    %431 = arith.addf %430, %429 : vector<16x1xf32>
    %432 = arith.divf %430, %431 : vector<16x1xf32>
    %cst_91 = arith.constant 1.000000e-01 : f32
    %433 = vector.broadcast %cst_91 : f32 to vector<16x1xf32>
    %434 = arith.addf %433, %432 : vector<16x1xf32>
    %435 = vector.extract_strided_slice %434 {offsets = [0, 0], sizes = [2, 1], strides = [1, 1]} : vector<16x1xf32> to vector<2x1xf32>
    %c0_92 = arith.constant 0 : index
    %c0_93 = arith.constant 0 : index
    %436 = vector.load %arg15[%c0_92, %c0_93] : memref<2x8xf32, #tpu.memory_space<vmem>>, vector<2x1xf32>
    tpu.vector_store %arg15[%c0_92, %c0_93], %435 {strides = array<i32>} : memref<2x8xf32, #tpu.memory_space<vmem>>, vector<2x1xf32>,
    %437 = vector.extract_strided_slice %434 {offsets = [2, 0], sizes = [2, 1], strides = [1, 1]} : vector<16x1xf32> to vector<2x1xf32>
    %c0_94 = arith.constant 0 : index
    %c1 = arith.constant 1 : index
    %438 = vector.load %arg15[%c0_94, %c1] : memref<2x8xf32, #tpu.memory_space<vmem>>, vector<2x1xf32>
    tpu.vector_store %arg15[%c0_94, %c1], %437 {strides = array<i32>} : memref<2x8xf32, #tpu.memory_space<vmem>>, vector<2x1xf32>,
    %439 = vector.extract_strided_slice %434 {offsets = [4, 0], sizes = [2, 1], strides = [1, 1]} : vector<16x1xf32> to vector<2x1xf32>
    %c0_95 = arith.constant 0 : index
    %c2 = arith.constant 2 : index
    %440 = vector.load %arg15[%c0_95, %c2] : memref<2x8xf32, #tpu.memory_space<vmem>>, vector<2x1xf32>
    tpu.vector_store %arg15[%c0_95, %c2], %439 {strides = array<i32>} : memref<2x8xf32, #tpu.memory_space<vmem>>, vector<2x1xf32>,
    %441 = vector.extract_strided_slice %434 {offsets = [6, 0], sizes = [2, 1], strides = [1, 1]} : vector<16x1xf32> to vector<2x1xf32>
    %c0_96 = arith.constant 0 : index
    %c3 = arith.constant 3 : index
    %442 = vector.load %arg15[%c0_96, %c3] : memref<2x8xf32, #tpu.memory_space<vmem>>, vector<2x1xf32>
    tpu.vector_store %arg15[%c0_96, %c3], %441 {strides = array<i32>} : memref<2x8xf32, #tpu.memory_space<vmem>>, vector<2x1xf32>,
    %443 = vector.extract_strided_slice %434 {offsets = [8, 0], sizes = [2, 1], strides = [1, 1]} : vector<16x1xf32> to vector<2x1xf32>
    %c0_97 = arith.constant 0 : index
    %c4 = arith.constant 4 : index
    %444 = vector.load %arg15[%c0_97, %c4] : memref<2x8xf32, #tpu.memory_space<vmem>>, vector<2x1xf32>
    tpu.vector_store %arg15[%c0_97, %c4], %443 {strides = array<i32>} : memref<2x8xf32, #tpu.memory_space<vmem>>, vector<2x1xf32>,
    %445 = vector.extract_strided_slice %434 {offsets = [10, 0], sizes = [2, 1], strides = [1, 1]} : vector<16x1xf32> to vector<2x1xf32>
    %c0_98 = arith.constant 0 : index
    %c5 = arith.constant 5 : index
    %446 = vector.load %arg15[%c0_98, %c5] : memref<2x8xf32, #tpu.memory_space<vmem>>, vector<2x1xf32>
    tpu.vector_store %arg15[%c0_98, %c5], %445 {strides = array<i32>} : memref<2x8xf32, #tpu.memory_space<vmem>>, vector<2x1xf32>,
    %447 = vector.extract_strided_slice %434 {offsets = [12, 0], sizes = [2, 1], strides = [1, 1]} : vector<16x1xf32> to vector<2x1xf32>
    %c0_99 = arith.constant 0 : index
    %c6 = arith.constant 6 : index
    %448 = vector.load %arg15[%c0_99, %c6] : memref<2x8xf32, #tpu.memory_space<vmem>>, vector<2x1xf32>
    tpu.vector_store %arg15[%c0_99, %c6], %447 {strides = array<i32>} : memref<2x8xf32, #tpu.memory_space<vmem>>, vector<2x1xf32>,
    %449 = vector.extract_strided_slice %434 {offsets = [14, 0], sizes = [2, 1], strides = [1, 1]} : vector<16x1xf32> to vector<2x1xf32>
    %c0_100 = arith.constant 0 : index
    %c7 = arith.constant 7 : index
    %450 = vector.load %arg15[%c0_100, %c7] : memref<2x8xf32, #tpu.memory_space<vmem>>, vector<2x1xf32>
    tpu.vector_store %arg15[%c0_100, %c7], %449 {strides = array<i32>} : memref<2x8xf32, #tpu.memory_space<vmem>>, vector<2x1xf32>,
    return
  }
  func.func @transform_0(%arg0: i32) -> (i32, i32, i32) {
    %c0_i32 = arith.constant 0 : i32
    %c0_i32_0 = arith.constant 0 : i32
    %c0_i32_1 = arith.constant 0 : i32
    return %arg0, %c0_i32, %c0_i32_0 : i32, i32, i32
  }
  func.func @transform_1(%arg0: i32) -> (i32, i32) {
    %c0_i32 = arith.constant 0 : i32
    %c0_i32_0 = arith.constant 0 : i32
    %c0_i32_1 = arith.constant 0 : i32
    return %c0_i32, %c0_i32_0 : i32, i32
  }
  func.func @transform_2(%arg0: i32) -> (i32, i32) {
    %c0_i32 = arith.constant 0 : i32
    %c0_i32_0 = arith.constant 0 : i32
    %c0_i32_1 = arith.constant 0 : i32
    return %c0_i32, %c0_i32_0 : i32, i32
  }
  func.func @transform_3(%arg0: i32) -> (i32, i32) {
    %c0_i32 = arith.constant 0 : i32
    %c0_i32_0 = arith.constant 0 : i32
    %c0_i32_1 = arith.constant 0 : i32
    return %c0_i32, %c0_i32_0 : i32, i32
  }
  func.func @transform_4(%arg0: i32) -> (i32, i32) {
    %c0_i32 = arith.constant 0 : i32
    %c0_i32_0 = arith.constant 0 : i32
    %c0_i32_1 = arith.constant 0 : i32
    return %c0_i32, %c0_i32_0 : i32, i32
  }
  func.func @transform_5(%arg0: i32) -> (i32, i32) {
    %c0_i32 = arith.constant 0 : i32
    %c0_i32_0 = arith.constant 0 : i32
    %c0_i32_1 = arith.constant 0 : i32
    return %c0_i32, %c0_i32_0 : i32, i32
  }
  func.func @transform_6(%arg0: i32) -> (i32, i32) {
    %c0_i32 = arith.constant 0 : i32
    %c0_i32_0 = arith.constant 0 : i32
    %c0_i32_1 = arith.constant 0 : i32
    return %c0_i32, %c0_i32_0 : i32, i32
  }
  func.func @transform_7(%arg0: i32) -> (i32, i32) {
    %c0_i32 = arith.constant 0 : i32
    %c0_i32_0 = arith.constant 0 : i32
    %c0_i32_1 = arith.constant 0 : i32
    return %c0_i32, %c0_i32_0 : i32, i32
  }
  func.func @transform_8(%arg0: i32) -> (i32, i32) {
    %c0_i32 = arith.constant 0 : i32
    %c0_i32_0 = arith.constant 0 : i32
    %c0_i32_1 = arith.constant 0 : i32
    return %c0_i32, %c0_i32_0 : i32, i32
  }
  func.func @transform_9(%arg0: i32) -> (i32, i32) {
    %c0_i32 = arith.constant 0 : i32
    %c0_i32_0 = arith.constant 0 : i32
    %c0_i32_1 = arith.constant 0 : i32
    return %c0_i32, %c0_i32_0 : i32, i32
  }
  func.func @transform_10(%arg0: i32) -> (i32, i32) {
    %c0_i32 = arith.constant 0 : i32
    %c0_i32_0 = arith.constant 0 : i32
    %c0_i32_1 = arith.constant 0 : i32
    return %c0_i32, %c0_i32_0 : i32, i32
  }
  func.func @transform_11(%arg0: i32) -> (i32, i32) {
    %c0_i32 = arith.constant 0 : i32
    %c0_i32_0 = arith.constant 0 : i32
    %c0_i32_1 = arith.constant 0 : i32
    return %c0_i32, %c0_i32_0 : i32, i32
  }
  func.func @transform_12(%arg0: i32) -> (i32, i32) {
    %c0_i32 = arith.constant 0 : i32
    %c0_i32_0 = arith.constant 0 : i32
    %c0_i32_1 = arith.constant 0 : i32
    return %c0_i32, %c0_i32_0 : i32, i32
  }
  func.func @transform_13(%arg0: i32) -> (i32, i32) {
    %c0_i32 = arith.constant 0 : i32
    %c0_i32_0 = arith.constant 0 : i32
    %c0_i32_1 = arith.constant 0 : i32
    return %c0_i32, %c0_i32_0 : i32, i32
  }
  func.func @transform_14(%arg0: i32) -> (i32, i32) {
    %c0_i32 = arith.constant 0 : i32
    %c0_i32_0 = arith.constant 0 : i32
    return %arg0, %c0_i32 : i32, i32
  }
}

</mosaic_0001>

<bundles_post_ra>
// kernel: meta_gru4rec_forward.1
= control target key start
LH: loop header
LB: loop body
LE: loop exit
PB: predicated region body
PF: predicated region fallthrough
CT: control target
= control target key end

     0   :  { %s4129_s0 = inlined_call_operand.vmem [shape: s32[1,16,1], index: 0, kind: input, shape index: {}]   ;;  %s4130_s1 = inlined_call_operand.vmem [shape: f32[52,32], index: 1, kind: input, shape index: {}]   ;;  %s4131_s2 = inlined_call_operand.vmem [shape: f32[32,96], index: 2, kind: input, shape index: {}]   ;;  %s4132_s3 = inlined_call_operand.vmem [shape: f32[32,96], index: 3, kind: input, shape index: {}]   ;;  %s4133_s4 = inlined_call_operand.vmem [shape: f32[1,96], index: 4, kind: input, shape index: {}]   ;;  %s4134_s5 = inlined_call_operand.vmem [shape: f32[1,32], index: 5, kind: input, shape index: {}]   ;;  %s4135_s6 = inlined_call_operand.vmem [shape: f32[32,96], index: 6, kind: input, shape index: {}]   ;;  %s4136_s7 = inlined_call_operand.vmem [shape: f32[32,96], index: 7, kind: input, shape index: {}]   ;;  %s4137_s8 = inlined_call_operand.vmem [shape: f32[1,96], index: 8, kind: input, shape index: {}]   ;;  %s4138_s9 = inlined_call_operand.vmem [shape: f32[1,32], index: 9, kind: input, shape index: {}]   ;;  %s4139_s10 = inlined_call_operand.vmem [shape: f32[32,32], index: 10, kind: input, shape index: {}]   ;;  %s4140_s11 = inlined_call_operand.vmem [shape: f32[1,32], index: 11, kind: input, shape index: {}]   ;;  %s4141_s12 = inlined_call_operand.vmem [shape: f32[1,32], index: 12, kind: input, shape index: {}]   ;;  %s4142_s13 = inlined_call_operand.<no memory space> [shape: f32[1,1], index: 13, kind: input, shape index: {}]   ;;  %s4143_s14 = inlined_call_operand.hbm [shape: f32[2,8], index: 14, kind: output, shape index: {}]  }
   0x1   :  { %v19_v0 = vstv %s4142_s13 }
   0x2   :  { %20 = vst [vmem:[#allocation2] sm:$0x1] %v19_v0 }
   0x3   :  { %v50_v1 = vld [vmem:[%s4129_s0] sm:$0xff]  ;;  %v3531_v3 = vmov 0   ;;  %v67_v4 = vld [vmem:[%s4130_s1 + $0x8] sm:$0xff]  ;;  %v68_v5 = vld [vmem:[%s4130_s1 + $0x10] sm:$0xff] }
   0x4   :  { %v66_v2 = vld [vmem:[%s4130_s1] sm:$0xff]  ;;  %3400 = vset.pattern.permute.xlu0 %v3531_v3  ;;  %v69_v6 = vld [vmem:[%s4130_s1 + $0x18] sm:$0xff] }
   0x5   :  { %55 = vperm.xlu0 %3400, %v50_v1   ;;  %v3214_v7 = vpack.c.bf16 %v67_v4, %v66_v2  ;;  %v3218_v8 = vpack.c.bf16 %v69_v6, %v68_v5 }
   0x6   :  { %21 = vsyncpa [#allocation4], 0  ;;  %v51_v9 = vld [vmem:[%s4129_s0 + $0x8] sm:$0xff]  ;;  %v70_v10 = vld [vmem:[%s4130_s1 + $0x20] sm:$0xff]  ;;  %vm80_vm0 = vcmask 1043456   ;;  %v52_v20 = vlaneseq  ;;  %vm73_vm1 = vcmask 424960  }
   0x7   :  { %v71_v11 = vld [vmem:[%s4130_s1 + $0x28] sm:$0xff]  ;;  %3215 = vmatprep.subr.bf16.mxu0 %v3214_v7  ;;  %v159_v13 = vld [vmem:[%s4131_s2] sm:$0xff]  ;;  %v161_v15 = vld [vmem:[%s4131_s2 + $0x10] sm:$0xff]  ;;  %v3532_v23 = vmov 0.0   ;;  %v3533_v27 = vmov 0.0|0.0   ;;  %vm3534_vm4 = vmmov 0  }
   0x8   :  { %3217 = vmatpush3.bf16.msra.mxu0 %v3214_v7  ;;  %v3222_v12 = vpack.c.bf16 %v71_v11, %v70_v10  ;;  %v160_v14 = vld [vmem:[%s4131_s2 + $0x8] sm:$0xff]  ;;  %v162_v17 = vld [vmem:[%s4131_s2 + $0x18] sm:$0xff]  ;;  %v72_v19 = vld [vmem:[%s4130_s1 + $0x30] sm:$0xf]  ;;  %v53_v21 = vand.u32 127, %v52_v20  ;;  %vm163_vm5 = vcmask 261120  }
   0x9   :  { %58 = vperm.xlu0 %3400, %v51_v9   ;;  %3219 = vmatprep.subr.bf16.mxu0 %v3218_v8  ;;  %v3226_v16 = vpack.c.bf16 %v160_v14, %v159_v13  ;;  %v3230_v18 = vpack.c.bf16 %v162_v17, %v161_v15  ;;  %v245_v28 = vld [vmem:[%s4132_s3] sm:$0xff]  ;;  %v246_v29 = vld [vmem:[%s4132_s3 + $0x8] sm:$0xff]  ;;  %v247_v33 = vld [vmem:[%s4132_s3 + $0x10] sm:$0xff]  ;;  %s3535_s29 = smov 64   ;;  %vm2517_vm6 = vcmask 1041408   ;;  %vm2520_vm7 = vcmask 1045504  }
   0xa   :  { %v3676_v31 = vpack.c.bf16 %v246_v29, %v245_v28  ;;  %v248_v34 = vld [vmem:[%s4132_s3 + $0x18] sm:$0xff]  ;;  %v3704_v38 = vld [vmem:[%s4133_s4] ss:$0 sm:$0xff]  ;;  %v267_v51 = vld [vmem:[%s4136_s7 + $0x8] sm:$0xff]  ;;  %vm2661_vm8 = vcmask 1024   ;;  %s3539_s22 = smov 2  }
   0xb   :  { %3227 = vmatprep.subr.bf16.mxu1 %v3226_v16  ;;  %v3687_v35 = vpack.c.bf16 %v248_v34, %v247_v33  ;;  %v2722_v43 = vld [vmem:[%s4134_s5] ss:$0 sm:$0xff]  ;;  %v268_v52 = vld [vmem:[%s4136_s7 + $0x10] sm:$0xff]  ;;  %v269_v54 = vld [vmem:[%s4136_s7 + $0x18] sm:$0xff]  ;;  %s3540_s1 = smov 4   ;;  %s3541_s2 = smov 3  }
   0xc   :  { %3221 = vmatpush3.bf16.msra.mxu0 %v3218_v8  ;;  %3229 = vmatpush3.bf16.msra.mxu1 %v3226_v16  ;;  %v266_v50 = vld [vmem:[%s4136_s7] sm:$0xff]  ;;  %v3729_v55 = vpack.c.bf16 %v269_v54, %v268_v52  ;;  %v263_v61 = vld [vmem:[%s4135_s6 + $0x8] sm:$0xff]  ;;  %v264_v62 = vld [vmem:[%s4135_s6 + $0x10] sm:$0xff]  ;;  %s3542_s13 = smov 6   ;;  %s3543_s23 = smov 7   ;;  %vm2667_vm9 = vcmask 11274  }
   0xd   :  { %3223 = vmatprep.subr.bf16.mxu0 %v3222_v12  ;;  %3231 = vmatprep.subr.bf16.mxu1 %v3230_v18  ;;  %v3723_v53 = vpack.c.bf16 %v267_v51, %v266_v50  ;;  %v262_v60 = vld [vmem:[%s4135_s6] sm:$0xff]  ;;  %v265_v0 = vld [vmem:[%s4135_s6 + $0x18] sm:$0xff]  ;;  %s3536_s6 = smov 96   ;;  %vm2672_vm10 = vcmask 21524   ;;  %vm2677_vm11 = vcmask 31774   ;;  %vm2683_vm12 = vcmask 33824  }
   0xe   :  { %v3753_v63 = vpack.c.bf16 %v263_v61, %v262_v60  ;;  %v3759_v1 = vpack.c.bf16 %v265_v0, %v264_v62  ;;  %v3772_v9 = vld [vmem:[%s4137_s8] ss:$0 sm:$0xff]  ;;  %vm2688_vm13 = vcmask 44074   ;;  %s3544_s24 = smov [#allocation3]   ;;  %vm2693_vm14 = vcmask 54324  }
   0xf   :  { %s2706_s25 = sshll.u32 %s3544_s24, 4  ;;  %vm2698_vm15 = vcmask 64574   ;;  %s2707_s25 = int_to_ptr.vmem [resolvable:$true] %s2706_s25 }
  0x10   :  { %3225 = vmatpush3.bf16.msra.mxu0 %v3222_v12  ;;  %3233 = vmatpush3.bf16.msra.mxu1 %v3230_v18  ;;  %v2724_v12 = vld [vmem:[%s4138_s9] ss:$0 sm:$0xff]  ;;  %p3512_p1 = scmp.lt.s32.totalorder %s2707_s25, %s2707_s25 }
  0x11   :  { %2923 = vmatprep.subr.msk.mxu0 %vm80_vm0, %v72_v19  ;;  %3234 = vmatprep.subr.bf16.mxu1 %v3533_v27 }
  0x14   :  { %2924 = vmatpush3.msk.msra.mxu0 %vm80_vm0, %v72_v19 }
  0x15   :  { %3240 = vmatprep.subr.bf16.mxu0 %v3533_v27 }
  0x84   :  { %v56_v22 = vpop.permute.xlu0 %55 }
  0x85   :  { %vm60_vm2 = vcmp.eq.s32.totalorder %v56_v22, %v53_v21 }
  0x86   :  { %v2714_v24 = vsel %vm60_vm2, 1.0, %v3532_v23 }
  0x87   :  { %2925 = vmatprep.mubr.msk.f32.mxu0 %vm73_vm1, %v2714_v24 }
  0x88   :  { %v59_v25 = vpop.permute.xlu0 %58 }
  0x89   :  { %vm61_vm3 = vcmp.eq.s32.totalorder %v59_v25, %v53_v21 }
  0x8a   :  { %v2715_v26 = vsel %vm61_vm3, 1.0, %v3532_v23 }
  0x8b   :  { %2926 = vmatmul.mubr.msk.f32.vlgmr.msra.gmra.mrb[0].mxu0 %vm73_vm1, %v2715_v26 }
  0x8c   :  { %2958 = vmatprep.mubr.msk.f32.mxu0 %vm3534_vm4, %v3532_v23  ;;  %3242 = vmatpush3.bf16.msra.mxu0 %v3753_v63 }
  0x8d   :  { %3243 = vmatprep.subr.bf16.mxu0 %v3533_v27 }
  0x90   :  { %3245 = vmatpush3.bf16.msra.mxu0 %v3759_v1 }
  0x91   :  { %3252 = vmatprep.subr.bf16.mxu0 %v3533_v27 }
 0x15e   :  { %v2927_v30 = vpop.f32.mrb[0].mxu0 }
 0x15f   :  { %v150_v32 = vpop.f32.mrb[1].mxu0 }
 0x160   :  { %2936 = vmatprep.mubr.msk.f32.mxu1 %vm163_vm5, %v150_v32 }
 0x161   :  { %2937 = vmatmul.mubr.msk.f32.vlgmr.msra.gmra.mrb[0].mxu1 %vm163_vm5, %v2927_v30 }
 0x162   :  { %3236 = vmatpush3.bf16.msra.mxu1 %v3676_v31  ;;  %2947 = vmatprep.mubr.msk.f32.mxu1 %vm3534_vm4, %v3532_v23 }
 0x163   :  { %3237 = vmatprep.subr.bf16.mxu1 %v3533_v27 }
 0x166   :  { %3239 = vmatpush3.bf16.msra.mxu1 %v3687_v35 }
 0x167   :  { %3246 = vmatprep.subr.bf16.mxu1 %v3533_v27 }
 0x169   :  { %2948 = vmatmul.mubr.f32.vlgmr.msra.gmra.mrb[2].mxu1 %v3532_v23 }
 0x16a   :  { %2969 = vmatprep.mubr.msk.f32.mxu1 %vm3534_vm4, %v3532_v23  ;;  %3248 = vmatpush3.bf16.msra.mxu1 %v3723_v53 }
 0x16b   :  { %3249 = vmatprep.subr.bf16.mxu1 %v3533_v27 }
 0x16e   :  { %3251 = vmatpush3.bf16.msra.mxu1 %v3729_v55 }
 0x16f   :  { %3258 = vmatprep.subr.bf16.mxu1 %v3533_v27 }
 0x171   :  { %2970 = vmatmul.mubr.f32.vlgmr.msra.gmra.mrb[4].mxu1 %v3532_v23 }
 0x172   :  { %2991 = vmatprep.mubr.msk.f32.mxu1 %vm3534_vm4, %v3532_v23  ;;  %3260 = vmatpush3.bf16.msra.mxu1 %v3753_v63 }
 0x173   :  { %3261 = vmatprep.subr.bf16.mxu1 %v3533_v27 }
 0x176   :  { %3263 = vmatpush3.bf16.msra.mxu1 %v3759_v1 }
 0x177   :  { %3270 = vmatprep.subr.bf16.mxu1 %v3533_v27 }
 0x234   :  { %v3697_v36 = vpop.f32.mrb[0].mxu1 }
 0x235   :  { %v3699_v37 = vpop.f32.mrb[1].mxu1 }
 0x23c   :  { %v352_v39 = vpop.f32.mrb[2].mxu1 }
 0x23d   :  { %v353_v40 = vadd.f32 %v3704_v38, %v352_v39  ;;  %v2949_v41 = vpop.f32.mrb[3].mxu1 }
 0x23f   :  { %v356_v42 = vadd.f32 %v353_v40, %v3699_v37  ;;  %368 = vrot.lane.b32.xlu1 %v353_v40, %s3535_s29 }
 0x241   :  { %v2725_v44 = vmul.f32 -1.442695, %v356_v42 }
 0x243   :  { %363 = vrot.lane.b32.xlu1 %v2722_v43, %s3535_s29  ;;  %3401 = vpow2.f32 %v2725_v44 }
 0x244   :  { %v527_v5 = vpop.f32.mrb[4].mxu1 }
 0x245   :  { %v2971_v8 = vpop.f32.mrb[5].mxu1  ;;  %v528_v11 = vadd.f32 %v3772_v9, %v527_v5 }
 0x24d   :  { %v3402_v45 = vpop.eup %3401 }
 0x24e   :  { %v360_v46 = vadd.f32 1.0, %v3402_v45 }
 0x250   :  { %3403 = vrcp.f32 %v360_v46 }
 0x25a   :  { %v3404_v47 = vpop.eup %3403 }
 0x25b   :  { %v378_v3 = vsub.f32 1.0, %v3404_v47  ;;  %v384_v6 = vmul.f32 0.0, %v3404_v47 }
 0x2b1   :  { %v369_v48 = vpop.permute.xlu1 %368 }
 0x2b2   :  { %v371_v49 = vmul.f32 %v3404_v47, %v369_v48 }
 0x2b4   :  { %373 = vrot.lane.b32.xlu0 %v371_v49, %s3535_s29 }
 0x2b5   :  { %v3737_v56 = vpop.permute.xlu1 %363 }
 0x2b6   :  { %v3741_v57 = vadd.f32 %v3737_v56, %v3699_v37 }
 0x326   :  { %v374_v58 = vpop.permute.xlu0 %373 }
 0x327   :  { %v376_v59 = vadd.f32 %v374_v58, %v3741_v57 }
 0x329   :  { %3405 = vtanh.f32 %v376_v59 }
 0x333   :  { %v3406_v2 = vpop.eup %3405 }
 0x334   :  { %380 = vrot.lane.b32.xlu1 %v3406_v2, %s3536_s6 }
 0x3a6   :  { %v381_v4 = vpop.permute.xlu1 %380 }
 0x3a7   :  { %v383_v7 = vmul.f32 %v381_v4, %v378_v3 }
 0x3a9   :  { %v385_v10 = vadd.f32 %v384_v6, %v383_v7 }
 0x3ab   :  { %387 = vrot.lane.b32.xlu0 %v385_v10, %s3536_s6  ;;  %v657_v49 = vrot.slane %v385_v10, 6 }
 0x3af   :  { %543 = vrot.lane.b32.xlu0 %v528_v11, %s3535_s29 }
 0x3b3   :  { %538 = vrot.lane.b32.xlu0 %v2724_v12, %s3535_s29 }
 0x41d   :  { %v388_v13 = vpop.permute.xlu0 %387 }
 0x41e   :  { %2959 = vmatmul.mubr.msk.f32.vlgmr.msra.gmra.mrb[2].mxu0 %vm163_vm5, %v388_v13 }
 0x41f   :  { %3254 = vmatpush3.bf16.msra.mxu0 %v3676_v31  ;;  %2980 = vmatprep.mubr.msk.f32.mxu0 %vm3534_vm4, %v3532_v23 }
 0x420   :  { %3255 = vmatprep.subr.bf16.mxu0 %v3533_v27 }
 0x421   :  { %v544_v39 = vpop.permute.xlu0 %543 }
 0x423   :  { %3257 = vmatpush3.bf16.msra.mxu0 %v3687_v35 }
 0x424   :  { %3264 = vmatprep.subr.bf16.mxu0 %v3533_v27 }
 0x425   :  { %v3800_v41 = vpop.permute.xlu0 %538 }
 0x426   :  { %2981 = vmatmul.mubr.msk.f32.vlgmr.msra.gmra.mrb[4].mxu0 %vm163_vm5, %v388_v13 }
 0x427   :  { %3266 = vmatpush3.bf16.msra.mxu0 %v3723_v53  ;;  %3002 = vmatprep.mubr.msk.f32.mxu0 %vm3534_vm4, %v3532_v23 }
 0x428   :  { %3267 = vmatprep.subr.bf16.mxu0 %v3533_v27 }
 0x42b   :  { %3269 = vmatpush3.bf16.msra.mxu0 %v3729_v55 }
 0x42c   :  { %3276 = vmatprep.subr.bf16.mxu0 %v3533_v27 }
 0x4f1   :  { %v457_v14 = vpop.f32.mrb[2].mxu0 }
 0x4f2   :  { %v2960_v15 = vpop.f32.mrb[3].mxu0  ;;  %v531_v21 = vadd.f32 %v528_v11, %v457_v14  ;;  %v541_v44 = vadd.f32 %v3800_v41, %v457_v14 }
 0x4f4   :  { %v2727_v24 = vmul.f32 -1.442695, %v531_v21 }
 0x4f9   :  { %v627_v16 = vpop.f32.mrb[4].mxu0 }
 0x4fa   :  { %v628_v17 = vadd.f32 %v3704_v38, %v627_v16  ;;  %v2982_v18 = vpop.f32.mrb[5].mxu0 }
 0x4fc   :  { %v632_v19 = vrot.slane %v628_v17, 6 }
 0x4fe   :  { %v634_v20 = vadd.f32 %v632_v19, %v3699_v37  ;;  %641 = vrot.lane.b32.xlu1 %v632_v19, %s3535_s29 }
 0x500   :  { %v2729_v22 = vmul.f32 -1.442695, %v634_v20 }
 0x502   :  { %3407 = vpow2.f32 %v2729_v22 }
 0x503   :  { %3409 = vpow2.f32 %v2727_v24 }
 0x50c   :  { %v3408_v25 = vpop.eup %3407 }
 0x50d   :  { %v3410_v26 = vpop.eup %3409  ;;  %v638_v28 = vadd.f32 1.0, %v3408_v25 }
 0x50e   :  { %v535_v29 = vadd.f32 1.0, %v3410_v26 }
 0x50f   :  { %3411 = vrcp.f32 %v638_v28 }
 0x510   :  { %3413 = vrcp.f32 %v535_v29 }
 0x519   :  { %v3412_v30 = vpop.eup %3411 }
 0x51a   :  { %v3414_v34 = vpop.eup %3413  ;;  %v651_v50 = vsub.f32 1.0, %v3412_v30  ;;  %v659_v52 = vmul.f32 %v3412_v30, %v657_v49 }
 0x51b   :  { %v546_v40 = vmul.f32 %v3414_v34, %v544_v39  ;;  %v553_v59 = vsub.f32 1.0, %v3414_v34  ;;  %v559_v61 = vmul.f32 0.0, %v3414_v34 }
 0x570   :  { %v642_v32 = vpop.permute.xlu1 %641 }
 0x571   :  { %v644_v33 = vmul.f32 %v3412_v30, %v642_v32 }
 0x573   :  { %646 = vrot.lane.b32.xlu1 %v644_v33, %s3535_s29 }
 0x577   :  { %548 = vrot.lane.b32.xlu1 %v546_v40, %s3535_s29 }
 0x5e5   :  { %v647_v42 = vpop.permute.xlu1 %646 }
 0x5e6   :  { %v649_v43 = vadd.f32 %v647_v42, %v3741_v57 }
 0x5e8   :  { %3415 = vtanh.f32 %v649_v43 }
 0x5e9   :  { %v549_v45 = vpop.permute.xlu1 %548 }
 0x5ea   :  { %v551_v46 = vadd.f32 %v549_v45, %v541_v44 }
 0x5ec   :  { %3417 = vtanh.f32 %v551_v46 }
 0x5f2   :  { %v3416_v47 = vpop.eup %3415 }
 0x5f3   :  { %653 = vrot.lane.b32.xlu0 %v3416_v47, %s3536_s6 }
 0x5f6   :  { %v3418_v48 = vpop.eup %3417 }
 0x5f7   :  { %555 = vrot.lane.b32.xlu1 %v3418_v48, %s3536_s6 }
 0x665   :  { %v654_v51 = vpop.permute.xlu0 %653 }
 0x666   :  { %v656_v54 = vmul.f32 %v654_v51, %v651_v50 }
 0x668   :  { %v3806_v58 = vadd.f32 %v659_v52, %v656_v54 }
 0x669   :  { %v556_v60 = vpop.permute.xlu1 %555 }
 0x66a   :  { %v558_v62 = vmul.f32 %v556_v60, %v553_v59  ;;  %v662_v0 = vrot.slane %v3806_v58, 2  ;;  %v935_v49 = vrot.slane %v3806_v58, 6 }
 0x66c   :  { %v3809_v2 = vadd.f32 %v559_v61, %v558_v62  ;;  %663 = vrot.lane.b32.xlu0 %v662_v0, %s3536_s6 }
 0x66e   :  { %738 = vrot.lane.b32.xlu1 %v3809_v2, %s3536_s6 }
 0x6de   :  { %v664_v3 = vpop.permute.xlu0 %663 }
 0x6df   :  { %2992 = vmatmul.mubr.msk.f32.vlgmr.msra.gmra.mrb[6].mxu1 %vm163_vm5, %v664_v3 }
 0x6e0   :  { %3272 = vmatpush3.bf16.msra.mxu1 %v3676_v31  ;;  %v739_v4 = vpop.permute.xlu1 %738  ;;  %3013 = vmatprep.mubr.msk.f32.mxu1 %vm3534_vm4, %v3532_v23 }
 0x6e1   :  { %3003 = vmatmul.mubr.msk.f32.vlgmr.msra.gmra.mrb[6].mxu0 %vm163_vm5, %v739_v4  ;;  %3273 = vmatprep.subr.bf16.mxu1 %v3533_v27 }
 0x6e2   :  { %3278 = vmatpush3.bf16.msra.mxu0 %v3753_v63  ;;  %3024 = vmatprep.mubr.msk.f32.mxu0 %vm3534_vm4, %v3532_v23 }
 0x6e3   :  { %3279 = vmatprep.subr.bf16.mxu0 %v3533_v27 }
 0x6e4   :  { %3275 = vmatpush3.bf16.msra.mxu1 %v3687_v35 }
 0x6e5   :  { %3282 = vmatprep.subr.bf16.mxu1 %v3533_v27 }
 0x6e6   :  { %3281 = vmatpush3.bf16.msra.mxu0 %v3759_v1 }
 0x6e7   :  { %3014 = vmatmul.mubr.msk.f32.vlgmr.msra.gmra.mrb[8].mxu1 %vm163_vm5, %v664_v3  ;;  %3288 = vmatprep.subr.bf16.mxu0 %v3533_v27 }
 0x6e8   :  { %3284 = vmatpush3.bf16.msra.mxu1 %v3723_v53  ;;  %3035 = vmatprep.mubr.msk.f32.mxu1 %vm3534_vm4, %v3532_v23 }
 0x6e9   :  { %3285 = vmatprep.subr.bf16.mxu1 %v3533_v27 }
 0x6ec   :  { %3287 = vmatpush3.bf16.msra.mxu1 %v3729_v55 }
 0x6ed   :  { %3294 = vmatprep.subr.bf16.mxu1 %v3533_v27 }
 0x7b2   :  { %v733_v5 = vpop.f32.mrb[6].mxu1 }
 0x7b3   :  { %v2993_v6 = vpop.f32.mrb[7].mxu1  ;;  %v819_v32 = vadd.f32 %v733_v5, %v3800_v41 }
 0x7b4   :  { %v808_v7 = vpop.f32.mrb[6].mxu0 }
 0x7b5   :  { %v809_v8 = vadd.f32 %v3772_v9, %v808_v7  ;;  %v3004_v10 = vpop.f32.mrb[7].mxu0 }
 0x7b7   :  { %v812_v11 = vadd.f32 %v809_v8, %v733_v5  ;;  %821 = vrot.lane.b32.xlu1 %v809_v8, %s3535_s29 }
 0x7b9   :  { %v2732_v17 = vmul.f32 -1.442695, %v812_v11 }
 0x7ba   :  { %v905_v12 = vpop.f32.mrb[8].mxu1 }
 0x7bb   :  { %v906_v13 = vadd.f32 %v3704_v38, %v905_v12  ;;  %v3015_v14 = vpop.f32.mrb[9].mxu1  ;;  %3419 = vpow2.f32 %v2732_v17 }
 0x7bd   :  { %v910_v15 = vrot.slane %v906_v13, 4 }
 0x7bf   :  { %v912_v16 = vadd.f32 %v910_v15, %v3699_v37  ;;  %919 = vrot.lane.b32.xlu0 %v910_v15, %s3535_s29 }
 0x7c1   :  { %v2734_v18 = vmul.f32 -1.442695, %v912_v16 }
 0x7c3   :  { %3421 = vpow2.f32 %v2734_v18 }
 0x7c5   :  { %v3420_v19 = vpop.eup %3419 }
 0x7c6   :  { %v816_v20 = vadd.f32 1.0, %v3420_v19 }
 0x7c8   :  { %3423 = vrcp.f32 %v816_v20 }
 0x7cd   :  { %v3422_v21 = vpop.eup %3421 }
 0x7ce   :  { %v916_v22 = vadd.f32 1.0, %v3422_v21 }
 0x7d0   :  { %3425 = vrcp.f32 %v916_v22 }
 0x7d2   :  { %v3424_v24 = vpop.eup %3423 }
 0x7d3   :  { %v831_v44 = vsub.f32 1.0, %v3424_v24  ;;  %v837_v46 = vmul.f32 %v3424_v24, %v3809_v2 }
 0x7da   :  { %v3426_v28 = vpop.eup %3425 }
 0x7db   :  { %v929_v50 = vsub.f32 1.0, %v3426_v28  ;;  %v937_v52 = vmul.f32 %v3426_v28, %v935_v49 }
 0x829   :  { %v822_v25 = vpop.permute.xlu1 %821 }
 0x82a   :  { %v824_v26 = vmul.f32 %v3424_v24, %v822_v25 }
 0x82c   :  { %826 = vrot.lane.b32.xlu1 %v824_v26, %s3535_s29 }
 0x831   :  { %v920_v29 = vpop.permute.xlu0 %919 }
 0x832   :  { %v922_v30 = vmul.f32 %v3426_v28, %v920_v29 }
 0x834   :  { %924 = vrot.lane.b32.xlu0 %v922_v30, %s3535_s29 }
 0x89e   :  { %v827_v33 = vpop.permute.xlu1 %826 }
 0x89f   :  { %v829_v34 = vadd.f32 %v827_v33, %v819_v32 }
 0x8a1   :  { %3427 = vtanh.f32 %v829_v34 }
 0x8a6   :  { %v925_v39 = vpop.permute.xlu0 %924 }
 0x8a7   :  { %v927_v40 = vadd.f32 %v925_v39, %v3741_v57 }
 0x8a9   :  { %3429 = vtanh.f32 %v927_v40 }
 0x8ab   :  { %v3428_v42 = vpop.eup %3427 }
 0x8ac   :  { %833 = vrot.lane.b32.xlu1 %v3428_v42, %s3536_s6 }
 0x8b3   :  { %v3430_v43 = vpop.eup %3429 }
 0x8b4   :  { %931 = vrot.lane.b32.xlu0 %v3430_v43, %s3536_s6 }
 0x91e   :  { %v834_v45 = vpop.permute.xlu1 %833 }
 0x91f   :  { %v836_v47 = vmul.f32 %v834_v45, %v831_v44 }
 0x921   :  { %v3847_v48 = vadd.f32 %v837_v46, %v836_v47 }
 0x923   :  { %1016 = vrot.lane.b32.xlu1 %v3847_v48, %s3536_s6 }
 0x926   :  { %v932_v51 = vpop.permute.xlu0 %931 }
 0x927   :  { %v934_v54 = vmul.f32 %v932_v51, %v929_v50 }
 0x929   :  { %v3852_v59 = vadd.f32 %v937_v52, %v934_v54 }
 0x92b   :  { %v940_v60 = vrot.slane %v3852_v59, 4  ;;  %v1213_v44 = vrot.slane %v3852_v59, 6 }
 0x92d   :  { %941 = vrot.lane.b32.xlu0 %v940_v60, %s3536_s6 }
 0x995   :  { %v1017_v61 = vpop.permute.xlu1 %1016 }
 0x996   :  { %3036 = vmatmul.mubr.msk.f32.vlgmr.msra.gmra.mrb[10].mxu1 %vm163_vm5, %v1017_v61 }
 0x997   :  { %3296 = vmatpush3.bf16.msra.mxu1 %v3753_v63  ;;  %3057 = vmatprep.mubr.msk.f32.mxu1 %vm3534_vm4, %v3532_v23 }
 0x998   :  { %3297 = vmatprep.subr.bf16.mxu1 %v3533_v27 }
 0x99b   :  { %3299 = vmatpush3.bf16.msra.mxu1 %v3759_v1 }
 0x99c   :  { %3306 = vmatprep.subr.bf16.mxu1 %v3533_v27 }
 0x99f   :  { %v942_v58 = vpop.permute.xlu0 %941 }
 0x9a0   :  { %3025 = vmatmul.mubr.msk.f32.vlgmr.msra.gmra.mrb[8].mxu0 %vm163_vm5, %v942_v58 }
 0x9a1   :  { %3290 = vmatpush3.bf16.msra.mxu0 %v3676_v31  ;;  %3046 = vmatprep.mubr.msk.f32.mxu0 %vm3534_vm4, %v3532_v23 }
 0x9a2   :  { %3291 = vmatprep.subr.bf16.mxu0 %v3533_v27 }
 0x9a5   :  { %3293 = vmatpush3.bf16.msra.mxu0 %v3687_v35 }
 0x9a6   :  { %3300 = vmatprep.subr.bf16.mxu0 %v3533_v27 }
 0x9a8   :  { %3047 = vmatmul.mubr.msk.f32.vlgmr.msra.gmra.mrb[10].mxu0 %vm163_vm5, %v942_v58 }
 0x9a9   :  { %3302 = vmatpush3.bf16.msra.mxu0 %v3723_v53  ;;  %3068 = vmatprep.mubr.msk.f32.mxu0 %vm3534_vm4, %v3532_v23 }
 0x9aa   :  { %3303 = vmatprep.subr.bf16.mxu0 %v3533_v27 }
 0x9ad   :  { %3305 = vmatpush3.bf16.msra.mxu0 %v3729_v55 }
 0x9ae   :  { %3312 = vmatprep.subr.bf16.mxu0 %v3533_v27 }
 0xa69   :  { %v1086_v62 = vpop.f32.mrb[10].mxu1 }
 0xa6a   :  { %v1087_v0 = vadd.f32 %v3772_v9, %v1086_v62  ;;  %v3037_v3 = vpop.f32.mrb[11].mxu1 }
 0xa6c   :  { %1099 = vrot.lane.b32.xlu1 %v1087_v0, %s3535_s29 }
 0xa73   :  { %v1011_v4 = vpop.f32.mrb[8].mxu0 }
 0xa74   :  { %v1090_v5 = vadd.f32 %v1087_v0, %v1011_v4  ;;  %v3026_v6 = vpop.f32.mrb[9].mxu0  ;;  %v1097_v25 = vadd.f32 %v1011_v4, %v3800_v41 }
 0xa76   :  { %v2737_v13 = vmul.f32 -1.442695, %v1090_v5 }
 0xa78   :  { %3431 = vpow2.f32 %v2737_v13 }
 0xa7b   :  { %v1183_v7 = vpop.f32.mrb[10].mxu0 }
 0xa7c   :  { %v1184_v8 = vadd.f32 %v3704_v38, %v1183_v7  ;;  %v3048_v10 = vpop.f32.mrb[11].mxu0 }
 0xa7e   :  { %v1188_v11 = vrot.slane %v1184_v8, 2 }
 0xa80   :  { %v1190_v12 = vadd.f32 %v1188_v11, %v3699_v37  ;;  %1197 = vrot.lane.b32.xlu0 %v1188_v11, %s3535_s29 }
 0xa82   :  { %v3432_v14 = vpop.eup %3431  ;;  %v2739_v16 = vmul.f32 -1.442695, %v1190_v12 }
 0xa83   :  { %v1094_v15 = vadd.f32 1.0, %v3432_v14 }
 0xa85   :  { %3433 = vrcp.f32 %v1094_v15 }
 0xa86   :  { %3435 = vpow2.f32 %v2739_v16 }
 0xa8f   :  { %v3434_v17 = vpop.eup %3433 }
 0xa90   :  { %v3436_v20 = vpop.eup %3435  ;;  %v1109_v34 = vsub.f32 1.0, %v3434_v17  ;;  %v1115_v40 = vmul.f32 %v3434_v17, %v3847_v48 }
 0xa91   :  { %v1194_v21 = vadd.f32 1.0, %v3436_v20 }
 0xa93   :  { %3437 = vrcp.f32 %v1194_v21 }
 0xa9d   :  { %v3438_v22 = vpop.eup %3437 }
 0xa9e   :  { %v1207_v45 = vsub.f32 1.0, %v3438_v22  ;;  %v1215_v47 = vmul.f32 %v3438_v22, %v1213_v44 }
 0xade   :  { %v1100_v18 = vpop.permute.xlu1 %1099 }
 0xadf   :  { %v1102_v19 = vmul.f32 %v3434_v17, %v1100_v18 }
 0xae1   :  { %1104 = vrot.lane.b32.xlu1 %v1102_v19, %s3535_s29 }
 0xaf2   :  { %v1198_v24 = vpop.permute.xlu0 %1197 }
 0xaf3   :  { %v1200_v37 = vmul.f32 %v3438_v22, %v1198_v24  ;;  %v3932_v24 = vadd.f32 %v3697_v36, %v3737_v56 }
 0xaf5   :  { %1202 = vrot.lane.b32.xlu0 %v1200_v37, %s3535_s29 }
 0xb53   :  { %v1105_v26 = vpop.permute.xlu1 %1104 }
 0xb54   :  { %v1107_v28 = vadd.f32 %v1105_v26, %v1097_v25 }
 0xb56   :  { %3439 = vtanh.f32 %v1107_v28 }
 0xb60   :  { %v3440_v29 = vpop.eup %3439 }
 0xb61   :  { %1111 = vrot.lane.b32.xlu1 %v3440_v29, %s3536_s6 }
 0xb67   :  { %v1203_v30 = vpop.permute.xlu0 %1202 }
 0xb68   :  { %v1205_v32 = vadd.f32 %v1203_v30, %v3741_v57 }
 0xb6a   :  { %3441 = vtanh.f32 %v1205_v32 }
 0xb74   :  { %v3442_v33 = vpop.eup %3441 }
 0xb75   :  { %1209 = vrot.lane.b32.xlu0 %v3442_v33, %s3536_s6 }
 0xbd3   :  { %v1112_v39 = vpop.permute.xlu1 %1111 }
 0xbd4   :  { %v1114_v42 = vmul.f32 %v1112_v39, %v1109_v34 }
 0xbd6   :  { %v3889_v43 = vadd.f32 %v1115_v40, %v1114_v42 }
 0xbd8   :  { %1294 = vrot.lane.b32.xlu1 %v3889_v43, %s3536_s6 }
 0xbe7   :  { %v1210_v46 = vpop.permute.xlu0 %1209 }
 0xbe8   :  { %v1212_v57 = vmul.f32 %v1210_v46, %v1207_v45 }
 0xbea   :  { %v3894_v49 = vadd.f32 %v1215_v47, %v1212_v57 }
 0xbec   :  { %v1218_v50 = vrot.slane %v3894_v49, 6 }
 0xbee   :  { %1219 = vrot.lane.b32.xlu0 %v1218_v50, %s3536_s6 }
 0xc4a   :  { %v1295_v51 = vpop.permute.xlu1 %1294 }
 0xc4b   :  { %3069 = vmatmul.mubr.msk.f32.vlgmr.msra.gmra.mrb[12].mxu0 %vm163_vm5, %v1295_v51 }
 0xc4c   :  { %3314 = vmatpush3.bf16.msra.mxu0 %v3753_v63  ;;  %3090 = vmatprep.mubr.msk.f32.mxu0 %vm3534_vm4, %v3532_v23 }
 0xc4d   :  { %3315 = vmatprep.subr.bf16.mxu0 %v3533_v27 }
 0xc50   :  { %3317 = vmatpush3.bf16.msra.mxu0 %v3759_v1 }
 0xc51   :  { %3324 = vmatprep.subr.bf16.mxu0 %v3533_v27 }
 0xc60   :  { %v1220_v52 = vpop.permute.xlu0 %1219 }
 0xc61   :  { %3058 = vmatmul.mubr.msk.f32.vlgmr.msra.gmra.mrb[12].mxu1 %vm163_vm5, %v1220_v52 }
 0xc62   :  { %3308 = vmatpush3.bf16.msra.mxu1 %v3676_v31  ;;  %3079 = vmatprep.mubr.msk.f32.mxu1 %vm3534_vm4, %v3532_v23 }
 0xc63   :  { %3309 = vmatprep.subr.bf16.mxu1 %v3533_v27 }
 0xc66   :  { %3311 = vmatpush3.bf16.msra.mxu1 %v3687_v35 }
 0xc67   :  { %3318 = vmatprep.subr.bf16.mxu1 %v3533_v27 }
 0xc69   :  { %3080 = vmatmul.mubr.msk.f32.vlgmr.msra.gmra.mrb[14].mxu1 %vm163_vm5, %v1220_v52 }
 0xc6a   :  { %3320 = vmatpush3.bf16.msra.mxu1 %v3723_v53  ;;  %3101 = vmatprep.mubr.msk.f32.mxu1 %vm3534_vm4, %v3532_v23 }
 0xc6b   :  { %3321 = vmatprep.subr.bf16.mxu1 %v3533_v27 }
 0xc6e   :  { %3323 = vmatpush3.bf16.msra.mxu1 %v3729_v55 }
 0xc6f   :  { %3330 = vmatprep.subr.bf16.mxu1 %v3533_v27 }
 0xd1e   :  { %v1364_v54 = vpop.f32.mrb[12].mxu0 }
 0xd1f   :  { %v1365_v59 = vadd.f32 %v3772_v9, %v1364_v54  ;;  %v3070_v60 = vpop.f32.mrb[13].mxu0 }
 0xd21   :  { %1377 = vrot.lane.b32.xlu1 %v1365_v59, %s3535_s29 }
 0xd34   :  { %v1289_v61 = vpop.f32.mrb[12].mxu1 }
 0xd35   :  { %v1368_v58 = vadd.f32 %v1365_v59, %v1289_v61  ;;  %v3059_v62 = vpop.f32.mrb[13].mxu1  ;;  %v1375_v19 = vadd.f32 %v1289_v61, %v3800_v41 }
 0xd37   :  { %v2742_v6 = vmul.f32 -1.442695, %v1368_v58 }
 0xd39   :  { %3443 = vpow2.f32 %v2742_v6 }
 0xd3c   :  { %v1461_v0 = vpop.f32.mrb[14].mxu1 }
 0xd3d   :  { %v1462_v3 = vadd.f32 %v3704_v38, %v1461_v0  ;;  %v3081_v4 = vpop.f32.mrb[15].mxu1 }
 0xd3f   :  { %v1465_v5 = vadd.f32 %v3697_v36, %v1462_v3  ;;  %1474 = vrot.lane.b32.xlu0 %v1462_v3, %s3535_s29 }
 0xd41   :  { %v2744_v10 = vmul.f32 -1.442695, %v1465_v5 }
 0xd43   :  { %v3444_v7 = vpop.eup %3443 }
 0xd44   :  { %v1372_v8 = vadd.f32 1.0, %v3444_v7 }
 0xd46   :  { %3445 = vrcp.f32 %v1372_v8 }
 0xd47   :  { %3447 = vpow2.f32 %v2744_v10 }
 0xd50   :  { %v3446_v11 = vpop.eup %3445 }
 0xd51   :  { %v3448_v14 = vpop.eup %3447  ;;  %v1387_v28 = vsub.f32 1.0, %v3446_v11  ;;  %v1393_v30 = vmul.f32 %v3446_v11, %v3889_v43 }
 0xd52   :  { %v1469_v15 = vadd.f32 1.0, %v3448_v14 }
 0xd54   :  { %3449 = vrcp.f32 %v1469_v15 }
 0xd5e   :  { %v3450_v16 = vpop.eup %3449 }
 0xd5f   :  { %v1484_v34 = vsub.f32 1.0, %v3450_v16  ;;  %v1491_v39 = vmul.f32 %v3450_v16, %v1218_v50 }
 0xd93   :  { %v1378_v12 = vpop.permute.xlu1 %1377 }
 0xd94   :  { %v1380_v13 = vmul.f32 %v3446_v11, %v1378_v12 }
 0xd96   :  { %1382 = vrot.lane.b32.xlu1 %v1380_v13, %s3535_s29 }
 0xdb1   :  { %v1475_v17 = vpop.permute.xlu0 %1474 }
 0xdb2   :  { %v1477_v18 = vmul.f32 %v3450_v16, %v1475_v17 }
 0xdb4   :  { %1479 = vrot.lane.b32.xlu0 %v1477_v18, %s3535_s29 }
 0xe08   :  { %v1383_v20 = vpop.permute.xlu1 %1382 }
 0xe09   :  { %v1385_v21 = vadd.f32 %v1383_v20, %v1375_v19 }
 0xe0b   :  { %3451 = vtanh.f32 %v1385_v21 }
 0xe15   :  { %v3452_v22 = vpop.eup %3451 }
 0xe16   :  { %1389 = vrot.lane.b32.xlu1 %v3452_v22, %s3536_s6 }
 0xe26   :  { %v1480_v37 = vpop.permute.xlu0 %1479 }
 0xe27   :  { %v1482_v25 = vadd.f32 %v1480_v37, %v3932_v24 }
 0xe29   :  { %3453 = vtanh.f32 %v1482_v25 }
 0xe33   :  { %v3454_v26 = vpop.eup %3453 }
 0xe34   :  { %1486 = vrot.lane.b32.xlu0 %v3454_v26, %s3536_s6 }
 0xe88   :  { %v1390_v29 = vpop.permute.xlu1 %1389 }
 0xe89   :  { %v1392_v32 = vmul.f32 %v1390_v29, %v1387_v28 }
 0xe8b   :  { %v3937_v33 = vadd.f32 %v1393_v30, %v1392_v32 }
 0xe8d   :  { %1569 = vrot.lane.b32.xlu1 %v3937_v33, %s3536_s6 }
 0xea6   :  { %v1487_v56 = vpop.permute.xlu0 %1486 }
 0xea7   :  { %v1489_v40 = vmul.f32 %v1487_v56, %v1484_v34 }
 0xea9   :  { %v3943_v42 = vadd.f32 %v1491_v39, %v1489_v40 }
 0xeab   :  { %1494 = vrot.lane.b32.xlu0 %v3943_v42, %s3536_s6  ;;  %v1766_v26 = vrot.slane %v3943_v42, 6 }
 0xeff   :  { %v1570_v44 = vpop.permute.xlu1 %1569 }
 0xf00   :  { %3102 = vmatmul.mubr.msk.f32.vlgmr.msra.gmra.mrb[16].mxu1 %vm163_vm5, %v1570_v44 }
 0xf01   :  { %3332 = vmatpush3.bf16.msra.mxu1 %v3753_v63  ;;  %3123 = vmatprep.mubr.msk.f32.mxu1 %vm3534_vm4, %v3532_v23 }
 0xf02   :  { %3333 = vmatprep.subr.bf16.mxu1 %v3533_v27 }
 0xf05   :  { %3335 = vmatpush3.bf16.msra.mxu1 %v3759_v1 }
 0xf06   :  { %3342 = vmatprep.subr.bf16.mxu1 %v3533_v27 }
 0xf1d   :  { %v1495_v45 = vpop.permute.xlu0 %1494 }
 0xf1e   :  { %3091 = vmatmul.mubr.msk.f32.vlgmr.msra.gmra.mrb[14].mxu0 %vm163_vm5, %v1495_v45 }
 0xf1f   :  { %3326 = vmatpush3.bf16.msra.mxu0 %v3676_v31  ;;  %3112 = vmatprep.mubr.msk.f32.mxu0 %vm3534_vm4, %v3532_v23 }
 0xf20   :  { %3327 = vmatprep.subr.bf16.mxu0 %v3533_v27 }
 0xf23   :  { %3329 = vmatpush3.bf16.msra.mxu0 %v3687_v35 }
 0xf24   :  { %3336 = vmatprep.subr.bf16.mxu0 %v3533_v27 }
 0xf26   :  { %3113 = vmatmul.mubr.msk.f32.vlgmr.msra.gmra.mrb[16].mxu0 %vm163_vm5, %v1495_v45 }
 0xf27   :  { %3338 = vmatpush3.bf16.msra.mxu0 %v3723_v53  ;;  %3134 = vmatprep.mubr.msk.f32.mxu0 %vm3534_vm4, %v3532_v23 }
 0xf28   :  { %3339 = vmatprep.subr.bf16.mxu0 %v3533_v27 }
 0xf2b   :  { %3341 = vmatpush3.bf16.msra.mxu0 %v3729_v55 }
 0xf2c   :  { %3348 = vmatprep.subr.bf16.mxu0 %v3533_v27 }
 0xfd3   :  { %v1639_v46 = vpop.f32.mrb[16].mxu1 }
 0xfd4   :  { %v1640_v47 = vadd.f32 %v3772_v9, %v1639_v46  ;;  %v3103_v57 = vpop.f32.mrb[17].mxu1 }
 0xfd6   :  { %1652 = vrot.lane.b32.xlu0 %v1640_v47, %s3535_s29 }
 0xff1   :  { %v1564_v49 = vpop.f32.mrb[14].mxu0 }
 0xff2   :  { %v1643_v50 = vadd.f32 %v1640_v47, %v1564_v49  ;;  %v3092_v51 = vpop.f32.mrb[15].mxu0  ;;  %v1650_v13 = vadd.f32 %v1564_v49, %v3800_v41 }
 0xff4   :  { %v2747_v58 = vmul.f32 -1.442695, %v1643_v50 }
 0xff6   :  { %3455 = vpow2.f32 %v2747_v58 }
 0xff9   :  { %v1736_v52 = vpop.f32.mrb[16].mxu0 }
 0xffa   :  { %v1737_v54 = vadd.f32 %v3704_v38, %v1736_v52  ;;  %v3114_v59 = vpop.f32.mrb[17].mxu0 }
 0xffc   :  { %v1741_v60 = vrot.slane %v1737_v54, 6 }
 0xffe   :  { %v1743_v61 = vadd.f32 %v3697_v36, %v1741_v60  ;;  %1750 = vrot.lane.b32.xlu1 %v1741_v60, %s3535_s29 }
0x1000   :  { %v3456_v62 = vpop.eup %3455  ;;  %v2749_v6 = vmul.f32 -1.442695, %v1743_v61 }
0x1001   :  { %v1647_v0 = vadd.f32 1.0, %v3456_v62 }
0x1003   :  { %3457 = vrcp.f32 %v1647_v0 }
0x1004   :  { %3459 = vpow2.f32 %v2749_v6 }
0x100d   :  { %v3458_v3 = vpop.eup %3457 }
0x100e   :  { %v3460_v7 = vpop.eup %3459  ;;  %v1662_v20 = vsub.f32 1.0, %v3458_v3  ;;  %v1668_v22 = vmul.f32 %v3458_v3, %v3937_v33 }
0x100f   :  { %v1747_v8 = vadd.f32 1.0, %v3460_v7 }
0x1011   :  { %3461 = vrcp.f32 %v1747_v8 }
0x101b   :  { %v3462_v10 = vpop.eup %3461 }
0x101c   :  { %v1760_v28 = vsub.f32 1.0, %v3462_v10  ;;  %v1768_v32 = vmul.f32 %v3462_v10, %v1766_v26 }
0x1048   :  { %v1653_v4 = vpop.permute.xlu0 %1652 }
0x1049   :  { %v1655_v5 = vmul.f32 %v3458_v3, %v1653_v4 }
0x104b   :  { %1657 = vrot.lane.b32.xlu0 %v1655_v5, %s3535_s29 }
0x1070   :  { %v1751_v11 = vpop.permute.xlu1 %1750 }
0x1071   :  { %v1753_v12 = vmul.f32 %v3462_v10, %v1751_v11 }
0x1073   :  { %1755 = vrot.lane.b32.xlu1 %v1753_v12, %s3535_s29 }
0x10bd   :  { %v1658_v14 = vpop.permute.xlu0 %1657 }
0x10be   :  { %v1660_v15 = vadd.f32 %v1658_v14, %v1650_v13 }
0x10c0   :  { %3463 = vtanh.f32 %v1660_v15 }
0x10ca   :  { %v3464_v16 = vpop.eup %3463 }
0x10cb   :  { %1664 = vrot.lane.b32.xlu0 %v3464_v16, %s3536_s6 }
0x10e5   :  { %v1756_v17 = vpop.permute.xlu1 %1755 }
0x10e6   :  { %v1758_v18 = vadd.f32 %v1756_v17, %v3932_v24 }
0x10e8   :  { %3465 = vtanh.f32 %v1758_v18 }
0x10f2   :  { %v3466_v19 = vpop.eup %3465 }
0x10f3   :  { %1762 = vrot.lane.b32.xlu1 %v3466_v19, %s3536_s6 }
0x113d   :  { %v1665_v21 = vpop.permute.xlu0 %1664 }
0x113e   :  { %v1667_v37 = vmul.f32 %v1665_v21, %v1662_v20 }
0x1140   :  { %v3980_v25 = vadd.f32 %v1668_v22, %v1667_v37 }
0x1142   :  { %1847 = vrot.lane.b32.xlu0 %v3980_v25, %s3536_s6 }
0x1165   :  { %v1763_v29 = vpop.permute.xlu1 %1762 }
0x1166   :  { %v1765_v30 = vmul.f32 %v1763_v29, %v1760_v28 }
0x1168   :  { %v3985_v34 = vadd.f32 %v1768_v32, %v1765_v30 }
0x116a   :  { %v1771_v56 = vrot.slane %v3985_v34, 2  ;;  %v2044_v21 = vrot.slane %v3985_v34, 6 }
0x116c   :  { %1772 = vrot.lane.b32.xlu1 %v1771_v56, %s3536_s6 }
0x11b4   :  { %v1848_v39 = vpop.permute.xlu0 %1847 }
0x11b5   :  { %3135 = vmatmul.mubr.msk.f32.vlgmr.msra.gmra.mrb[18].mxu0 %vm163_vm5, %v1848_v39 }
0x11b6   :  { %3350 = vmatpush3.bf16.msra.mxu0 %v3753_v63  ;;  %3156 = vmatprep.mubr.msk.f32.mxu0 %vm3534_vm4, %v3532_v23 }
0x11b7   :  { %3351 = vmatprep.subr.bf16.mxu0 %v3533_v27 }
0x11ba   :  { %3353 = vmatpush3.bf16.msra.mxu0 %v3759_v1 }
0x11bb   :  { %3360 = vmatprep.subr.bf16.mxu0 %v3533_v27 }
0x11de   :  { %v1773_v40 = vpop.permute.xlu1 %1772 }
0x11df   :  { %3124 = vmatmul.mubr.msk.f32.vlgmr.msra.gmra.mrb[18].mxu1 %vm163_vm5, %v1773_v40 }
0x11e0   :  { %3344 = vmatpush3.bf16.msra.mxu1 %v3676_v31  ;;  %3145 = vmatprep.mubr.msk.f32.mxu1 %vm3534_vm4, %v3532_v23 }
0x11e1   :  { %3345 = vmatprep.subr.bf16.mxu1 %v3533_v27 }
0x11e4   :  { %3347 = vmatpush3.bf16.msra.mxu1 %v3687_v35 }
0x11e5   :  { %3354 = vmatprep.subr.bf16.mxu1 %v3533_v27 }
0x11e7   :  { %3146 = vmatmul.mubr.msk.f32.vlgmr.msra.gmra.mrb[20].mxu1 %vm163_vm5, %v1773_v40 }
0x11e8   :  { %3356 = vmatpush3.bf16.msra.mxu1 %v3723_v53  ;;  %3167 = vmatprep.mubr.msk.f32.mxu1 %vm3534_vm4, %v3532_v23 }
0x11e9   :  { %3357 = vmatprep.subr.bf16.mxu1 %v3533_v27 }
0x11ec   :  { %3359 = vmatpush3.bf16.msra.mxu1 %v3729_v55 }
0x11ed   :  { %3366 = vmatprep.subr.bf16.mxu1 %v3533_v27 }
0x1288   :  { %v1917_v42 = vpop.f32.mrb[18].mxu0 }
0x1289   :  { %v1918_v44 = vadd.f32 %v3772_v9, %v1917_v42  ;;  %v3136_v45 = vpop.f32.mrb[19].mxu0 }
0x128b   :  { %1930 = vrot.lane.b32.xlu0 %v1918_v44, %s3535_s29 }
0x12b2   :  { %v1842_v46 = vpop.f32.mrb[18].mxu1 }
0x12b3   :  { %v1921_v47 = vadd.f32 %v1918_v44, %v1842_v46  ;;  %v3125_v57 = vpop.f32.mrb[19].mxu1  ;;  %v1928_v8 = vadd.f32 %v1842_v46, %v3800_v41 }
0x12b5   :  { %v2752_v59 = vmul.f32 -1.442695, %v1921_v47 }
0x12b7   :  { %3467 = vpow2.f32 %v2752_v59 }
0x12ba   :  { %v2014_v49 = vpop.f32.mrb[20].mxu1 }
0x12bb   :  { %v2015_v50 = vadd.f32 %v3704_v38, %v2014_v49  ;;  %v3147_v51 = vpop.f32.mrb[21].mxu1 }
0x12bd   :  { %v2019_v52 = vrot.slane %v2015_v50, 4 }
0x12bf   :  { %v2021_v54 = vadd.f32 %v3697_v36, %v2019_v52  ;;  %2028 = vrot.lane.b32.xlu1 %v2019_v52, %s3535_s29 }
0x12c1   :  { %v3468_v60 = vpop.eup %3467  ;;  %v2754_v3 = vmul.f32 -1.442695, %v2021_v54 }
0x12c2   :  { %v1925_v61 = vadd.f32 1.0, %v3468_v60 }
0x12c4   :  { %3469 = vrcp.f32 %v1925_v61 }
0x12c5   :  { %3471 = vpow2.f32 %v2754_v3 }
0x12ce   :  { %v3470_v58 = vpop.eup %3469 }
0x12cf   :  { %v3472_v4 = vpop.eup %3471  ;;  %v1940_v16 = vsub.f32 1.0, %v3470_v58  ;;  %v1946_v18 = vmul.f32 %v3470_v58, %v3980_v25 }
0x12d0   :  { %v2025_v38 = vadd.f32 1.0, %v3472_v4 }
0x12d2   :  { %3473 = vrcp.f32 %v2025_v38 }
0x12dc   :  { %v3474_v5 = vpop.eup %3473 }
0x12dd   :  { %v2038_v22 = vsub.f32 1.0, %v3474_v5  ;;  %v2046_v26 = vmul.f32 %v3474_v5, %v2044_v21 }
0x12fd   :  { %v1931_v62 = vpop.permute.xlu0 %1930 }
0x12fe   :  { %v1933_v0 = vmul.f32 %v3470_v58, %v1931_v62 }
0x1300   :  { %1935 = vrot.lane.b32.xlu0 %v1933_v0, %s3535_s29 }
0x1331   :  { %v2029_v6 = vpop.permute.xlu1 %2028 }
0x1332   :  { %v2031_v7 = vmul.f32 %v3474_v5, %v2029_v6 }
0x1334   :  { %2033 = vrot.lane.b32.xlu1 %v2031_v7, %s3535_s29 }
0x1372   :  { %v1936_v10 = vpop.permute.xlu0 %1935 }
0x1373   :  { %v1938_v11 = vadd.f32 %v1936_v10, %v1928_v8 }
0x1375   :  { %3475 = vtanh.f32 %v1938_v11 }
0x137f   :  { %v3476_v12 = vpop.eup %3475 }
0x1380   :  { %1942 = vrot.lane.b32.xlu0 %v3476_v12, %s3536_s6 }
0x13a6   :  { %v2034_v13 = vpop.permute.xlu1 %2033 }
0x13a7   :  { %v2036_v14 = vadd.f32 %v2034_v13, %v3932_v24 }
0x13a9   :  { %3477 = vtanh.f32 %v2036_v14 }
0x13b3   :  { %v3478_v15 = vpop.eup %3477 }
0x13b4   :  { %2040 = vrot.lane.b32.xlu1 %v3478_v15, %s3536_s6 }
0x13f2   :  { %v1943_v17 = vpop.permute.xlu0 %1942 }
0x13f3   :  { %v1945_v19 = vmul.f32 %v1943_v17, %v1940_v16 }
0x13f5   :  { %v4022_v20 = vadd.f32 %v1946_v18, %v1945_v19  ;;  %v3506_v18 = vld [vmem:[%s4137_s8] ss:$0 sm:$0xff] }
0x13f7   :  { %2125 = vrot.lane.b32.xlu0 %v4022_v20, %s3536_s6 }
0x1426   :  { %v2041_v37 = vpop.permute.xlu1 %2040 }
0x1427   :  { %v2043_v28 = vmul.f32 %v2041_v37, %v2038_v22 }
0x1429   :  { %v4027_v29 = vadd.f32 %v2046_v26, %v2043_v28 }
0x142b   :  { %v2049_v30 = vrot.slane %v4027_v29, 4  ;;  %v2322_v8 = vrot.slane %v4027_v29, 6 }
0x142d   :  { %2050 = vrot.lane.b32.xlu1 %v2049_v30, %s3536_s6 }
0x1469   :  { %v2126_v32 = vpop.permute.xlu0 %2125 }
0x146a   :  { %3168 = vmatmul.mubr.msk.f32.vlgmr.msra.gmra.mrb[22].mxu1 %vm163_vm5, %v2126_v32 }
0x146b   :  { %3368 = vmatpush3.bf16.msra.mxu1 %v3753_v63  ;;  %3189 = vmatprep.mubr.msk.f32.mxu1 %vm3534_vm4, %v3532_v23 }
0x146c   :  { %3369 = vmatprep.subr.bf16.mxu1 %v3533_v27 }
0x146f   :  { %3371 = vmatpush3.bf16.msra.mxu1 %v3759_v1 }
0x149f   :  { %v2051_v34 = vpop.permute.xlu1 %2050 }
0x14a0   :  { %3157 = vmatmul.mubr.msk.f32.vlgmr.msra.gmra.mrb[20].mxu0 %vm163_vm5, %v2051_v34 }
0x14a1   :  { %3362 = vmatpush3.bf16.msra.mxu0 %v3676_v31  ;;  %3178 = vmatprep.mubr.msk.f32.mxu0 %vm3534_vm4, %v3532_v23 }
0x14a2   :  { %3363 = vmatprep.subr.bf16.mxu0 %v3533_v27 }
0x14a5   :  { %3365 = vmatpush3.bf16.msra.mxu0 %v3687_v35 }
0x14a6   :  { %3372 = vmatprep.subr.bf16.mxu0 %v3533_v27 }
0x14a8   :  { %3179 = vmatmul.mubr.msk.f32.vlgmr.msra.gmra.mrb[22].mxu0 %vm163_vm5, %v2051_v34  ;;  %v2504_v34 = vrot.slane %v3847_v48, 6 }
0x14a9   :  { %3374 = vmatpush3.bf16.msra.mxu0 %v3723_v53  ;;  %3200 = vmatprep.mubr.msk.f32.mxu0 %vm3534_vm4, %v3532_v23  ;;  %v3505_v53 = vld [vmem:[%s4133_s4] ss:$0 sm:$0xff] }
0x14aa   :  { %3375 = vmatprep.subr.bf16.mxu0 %v3533_v27 }
0x14ad   :  { %3377 = vmatpush3.bf16.msra.mxu0 %v3729_v55 }
0x153d   :  { %v2195_v31 = vpop.f32.mrb[22].mxu1 }
0x153e   :  { %v2196_v63 = vadd.f32 %v3772_v9, %v2195_v31  ;;  %v3169_v1 = vpop.f32.mrb[23].mxu1 }
0x1540   :  { %2208 = vrot.lane.b32.xlu0 %v2196_v63, %s3535_s29 }
0x1573   :  { %v2120_v35 = vpop.f32.mrb[20].mxu0 }
0x1574   :  { %v2199_v56 = vadd.f32 %v2196_v63, %v2120_v35  ;;  %v3158_v39 = vpop.f32.mrb[21].mxu0  ;;  %v2206_v59 = vadd.f32 %v2120_v35, %v3800_v41  ;;  %v2506_v63 = vrot.slane %v3889_v43, 4  ;;  %v2508_v35 = vrot.slane %v3937_v33, 2  ;;  %v2525_v33 = vld [vmem:[%s4139_s10] sm:$0xff] }
0x1576   :  { %v2757_v55 = vmul.f32 -1.442695, %v2199_v56  ;;  %v2518_v56 = vsel %vm2517_vm6, %v3809_v2, %v2504_v34  ;;  %v2526_v2 = vld [vmem:[%s4139_s10 + $0x8] sm:$0xff] }
0x1577   :  { %v2519_v39 = vsel %vm80_vm0, %v2518_v56, %v2506_v63 }
0x1578   :  { %3479 = vpow2.f32 %v2757_v55 }
0x157b   :  { %v2292_v40 = vpop.f32.mrb[22].mxu0 }
0x157c   :  { %v2293_v42 = vadd.f32 %v3505_v53, %v2292_v40  ;;  %v3180_v23 = vpop.f32.mrb[23].mxu0  ;;  %v2521_v40 = vsel %vm2520_vm7, %v2519_v39, %v2508_v35 }
0x157d   :  { %v2527_v23 = vld [vmem:[%s4139_s10 + $0x10] sm:$0xff] }
0x157e   :  { %v2297_v44 = vrot.slane %v2293_v42, 2 }
0x1580   :  { %v2299_v27 = vadd.f32 %v3697_v36, %v2297_v44  ;;  %2306 = vrot.lane.b32.xlu1 %v2297_v44, %s3535_s29  ;;  %v3378_v44 = vpack.c.bf16 %v2526_v2, %v2525_v33 }
0x1582   :  { %v3480_v9 = vpop.eup %3479  ;;  %v2759_v49 = vmul.f32 -1.442695, %v2299_v27  ;;  %3379 = vmatprep.subr.bf16.mxu1 %v3378_v44 }
0x1583   :  { %v2203_v45 = vadd.f32 1.0, %v3480_v9 }
0x1585   :  { %3481 = vrcp.f32 %v2203_v45 }
0x1586   :  { %3483 = vpow2.f32 %v2759_v49 }
0x158f   :  { %v3482_v46 = vpop.eup %3481 }
0x1590   :  { %v3484_v50 = vpop.eup %3483  ;;  %v2218_v4 = vsub.f32 1.0, %v3482_v46  ;;  %v2224_v5 = vmul.f32 %v3482_v46, %v4022_v20 }
0x1591   :  { %v2303_v51 = vadd.f32 1.0, %v3484_v50 }
0x1593   :  { %3485 = vrcp.f32 %v2303_v51 }
0x159d   :  { %v3486_v52 = vpop.eup %3485 }
0x159e   :  { %v2316_v10 = vsub.f32 1.0, %v3486_v52  ;;  %v2324_v12 = vmul.f32 %v3486_v52, %v2322_v8 }
0x15b2   :  { %v2209_v47 = vpop.permute.xlu0 %2208 }
0x15b3   :  { %v2211_v57 = vmul.f32 %v3482_v46, %v2209_v47  ;;  %v2510_v46 = vrot.slane %v4022_v20, 6  ;;  %v2763_v20 = vld [vmem:[%s4140_s11] ss:$0 sm:$0xff]  ;;  %s3537_s11 = smov 5  }
0x15b5   :  { %2213 = vrot.lane.b32.xlu0 %v2211_v57, %s3535_s29 }
0x15f2   :  { %v2307_v54 = vpop.permute.xlu1 %2306 }
0x15f3   :  { %v2309_v36 = vmul.f32 %v3486_v52, %v2307_v54  ;;  %v2522_v52 = vsel %vm2517_vm6, %v3980_v25, %v2510_v46  ;;  %v2766_v25 = vld [vmem:[%s4141_s12] ss:$0 sm:$0xff]  ;;  %s3538_s12 = smov 1  }
0x15f5   :  { %2311 = vrot.lane.b32.xlu1 %v2309_v36, %s3535_s29 }
0x1627   :  { %v2214_v60 = vpop.permute.xlu0 %2213 }
0x1628   :  { %v2216_v61 = vadd.f32 %v2214_v60, %v2206_v59 }
0x162a   :  { %3487 = vtanh.f32 %v2216_v61 }
0x1634   :  { %v3488_v58 = vpop.eup %3487 }
0x1635   :  { %2220 = vrot.lane.b32.xlu0 %v3488_v58, %s3536_s6 }
0x1667   :  { %v2312_v62 = vpop.permute.xlu1 %2311 }
0x1668   :  { %v2314_v0 = vadd.f32 %v2312_v62, %v3932_v24 }
0x166a   :  { %3489 = vtanh.f32 %v2314_v0 }
0x1674   :  { %v3490_v3 = vpop.eup %3489 }
0x1675   :  { %2318 = vrot.lane.b32.xlu1 %v3490_v3, %s3536_s6 }
0x16a7   :  { %v2221_v38 = vpop.permute.xlu0 %2220 }
0x16a8   :  { %v2223_v6 = vmul.f32 %v2221_v38, %v2218_v4 }
0x16aa   :  { %v4064_v7 = vadd.f32 %v2224_v5, %v2223_v6 }
0x16ac   :  { %2403 = vrot.lane.b32.xlu0 %v4064_v7, %s3536_s6  ;;  %v2512_v49 = vrot.slane %v4064_v7, 4 }
0x16ae   :  { %v2523_v54 = vsel %vm80_vm0, %v2522_v52, %v2512_v49 }
0x16e7   :  { %v2319_v11 = vpop.permute.xlu1 %2318 }
0x16e8   :  { %v2321_v24 = vmul.f32 %v2319_v11, %v2316_v10 }
0x16ea   :  { %v2325_v13 = vadd.f32 %v2324_v12, %v2321_v24 }
0x16ec   :  { %v2327_v14 = vrot.slane %v2325_v13, 6 }
0x16ee   :  { %2328 = vrot.lane.b32.xlu1 %v2327_v14, %s3536_s6 }
0x171e   :  { %v2404_v15 = vpop.permute.xlu0 %2403 }
0x171f   :  { %3201 = vmatmul.mubr.msk.f32.vlgmr.msra.gmra.mrb[24].mxu0 %vm163_vm5, %v2404_v15 }
0x1760   :  { %v2329_v16 = vpop.permute.xlu1 %2328 }
0x1761   :  { %3190 = vmatmul.mubr.msk.f32.vlgmr.msra.gmra.mrb[24].mxu1 %vm163_vm5, %v2329_v16 }
0x1762   :  { %3381 = vmatpush3.bf16.msra.mxu1 %v3378_v44 }
0x17f2   :  { %v2473_v17 = vpop.f32.mrb[24].mxu0 }
0x17f3   :  { %v2474_v19 = vadd.f32 %v3506_v18, %v2473_v17  ;;  %v3202_v21 = vpop.f32.mrb[25].mxu0 }
0x17f5   :  { %2486 = vrot.lane.b32.xlu0 %v2474_v19, %s3535_s29 }
0x1834   :  { %v2398_v22 = vpop.f32.mrb[24].mxu1 }
0x1835   :  { %v2477_v37 = vadd.f32 %v2474_v19, %v2398_v22  ;;  %v3191_v26 = vpop.f32.mrb[25].mxu1  ;;  %v2484_v48 = vadd.f32 %v2398_v22, %v3800_v41  ;;  %v2528_v41 = vld [vmem:[%s4139_s10 + $0x18] sm:$0xff] }
0x1836   :  { %v3382_v27 = vpack.c.bf16 %v2528_v41, %v2527_v23 }
0x1837   :  { %v2762_v28 = vmul.f32 -1.442695, %v2477_v37 }
0x1838   :  { %3383 = vmatprep.subr.bf16.mxu1 %v3382_v27 }
0x1839   :  { %3491 = vpow2.f32 %v2762_v28  ;;  %3385 = vmatpush3.bf16.msra.mxu1 %v3382_v27 }
0x1843   :  { %v3492_v29 = vpop.eup %3491 }
0x1844   :  { %v2481_v30 = vadd.f32 1.0, %v3492_v29 }
0x1846   :  { %3493 = vrcp.f32 %v2481_v30 }
0x1850   :  { %v3494_v32 = vpop.eup %3493 }
0x1851   :  { %v2496_v9 = vsub.f32 1.0, %v3494_v32  ;;  %v2502_v47 = vmul.f32 %v3494_v32, %v4064_v7  ;;  %v2767_v7 = vld [vmem:[#allocation2] ss:$0 sm:$0xff] }
0x1867   :  { %v2487_v31 = vpop.permute.xlu0 %2486 }
0x1868   :  { %v2489_v1 = vmul.f32 %v3494_v32, %v2487_v31 }
0x186a   :  { %2491 = vrot.lane.b32.xlu1 %v2489_v1, %s3535_s29 }
0x186e   :  { %2538 = vrot.lane.b32.xlu1 %v2521_v40, %s3536_s6 }
0x18dc   :  { %v2492_v53 = vpop.permute.xlu1 %2491 }
0x18dd   :  { %v2494_v43 = vadd.f32 %v2492_v53, %v2484_v48 }
0x18df   :  { %3495 = vtanh.f32 %v2494_v43 }
0x18e0   :  { %v2539_v42 = vpop.permute.xlu1 %2538 }
0x18e1   :  { %3211 = vmatprep.mubr.msk.f32.mxu1 %vm163_vm5, %v2539_v42 }
0x18e9   :  { %v3496_v55 = vpop.eup %3495 }
0x18ea   :  { %2498 = vrot.lane.b32.xlu0 %v3496_v55, %s3536_s6 }
0x195c   :  { %v2499_v45 = vpop.permute.xlu0 %2498 }
0x195d   :  { %v2501_v57 = vmul.f32 %v2499_v45, %v2496_v9 }
0x195f   :  { %v2503_v50 = vadd.f32 %v2502_v47, %v2501_v57 }
0x1961   :  { %v2515_v51 = vrot.slane %v2503_v50, 2 }
0x1963   :  { %v2524_v36 = vsel %vm2520_vm7, %v2523_v54, %v2515_v51 }
0x1964   :  { %2540 = vrot.lane.b32.xlu0 %v2524_v36, %s3536_s6  ;;  %s3507_s6 = scalar_lea.vmem %s2707_s25, 32 }
0x1965   :  { %p3508_p0 = scmp.ne.s32.totalorder %s2707_s25, %s3507_s6  ;;  %p3513_p2 = scmp.lt.s32.totalorder %s3507_s6, %s3507_s6 }
0x1967   :  { %p3514_p3 = por %p3513_p2, %p3512_p1 }
0x1969   :  { %p3515_p4 = pnand %p3514_p3, %p3508_p0 }
0x19d6   :  { %v2541_v59 = vpop.permute.xlu0 %2540 }
0x19d7   :  { %3212 = vmatmul.mubr.msk.f32.vlgmr.msra.gmra.mrb[26].mxu1 %vm163_vm5, %v2541_v59 }
0x1aaa   :  { %v3213_v60 = vpop.f32.mrb[26].mxu1 }
0x1aab   :  { %v2618_v61 = vadd.f32 %v3213_v60, %v2763_v20  ;;  %v2612_v58 = vpop.f32.mrb[27].mxu1 }
0x1aac   :  { %v2613_v62 = vadd.f32 %v2763_v20, %v2612_v58 }
0x1aad   :  { %v2622_v0 = vmax.f32 %v2618_v61, 0.0 }
0x1aae   :  { %v2621_v3 = vmax.f32 %v2613_v62, 0.0 }
0x1aaf   :  { %v2631_v4 = vmul.f32 %v2766_v25, %v2622_v0 }
0x1ab0   :  { %v2630_v38 = vmul.f32 %v2766_v25, %v2621_v3 }
0x1ab1   :  { %v2635_v5 = vsel %vm163_vm5, %v2631_v4, 0.0 }
0x1ab2   :  { %2636 = vadd.xlane.f32.xlu0 %v2635_v5  ;;  %v2632_v6 = vsel %vm163_vm5, %v2630_v38, 0.0 }
0x1ab3   :  { %2633 = vadd.xlane.f32.xlu1 %v2632_v6 }
0x1b3f   :  { %v2637_v8 = vpop.xlane.xlu0 %2636 }
0x1b40   :  { %v2646_v10 = vadd.f32 %v2767_v7, %v2637_v8  ;;  %v2634_v11 = vpop.xlane.xlu1 %2633 }
0x1b41   :  { %v2645_v12 = vadd.f32 %v2767_v7, %v2634_v11 }
0x1b42   :  { %v2769_v24 = vmul.f32 -1.442695, %v2646_v10 }
0x1b43   :  { %v2768_v13 = vmul.f32 -1.442695, %v2645_v12 }
0x1b44   :  { %3497 = vpow2.f32 %v2769_v24 }
0x1b45   :  { %3499 = vpow2.f32 %v2768_v13 }
0x1b4e   :  { %v3498_v14 = vpop.eup %3497 }
0x1b4f   :  { %v3500_v15 = vpop.eup %3499  ;;  %v2654_v16 = vadd.f32 1.0, %v3498_v14 }
0x1b50   :  { %v2653_v17 = vadd.f32 1.0, %v3500_v15 }
0x1b51   :  { %3501 = vrcp.f32 %v2654_v16 }
0x1b52   :  { %3503 = vrcp.f32 %v2653_v17 }
0x1b5b   :  { %v3502_v18 = vpop.eup %3501 }
0x1b5c   :  { %v3504_v19 = vpop.eup %3503  ;;  %v2660_v21 = vadd.f32 0.1, %v3502_v18 }
0x1b5d   :  { %v2659_v22 = vadd.f32 0.1, %v3504_v19 }
0x1b5e   :  { %2685 = vrot.lane.b32.xlu1 %v2660_v21, %s3537_s11 }
0x1b5f   :  { %2664 = vrot.lane.b32.xlu0 %v2659_v22, %s3538_s12  ;;  %2662 = vst.msk [vmem:[#allocation3] sm:$0x3] %vm2661_vm8, %v2659_v22 }
0x1b62   :  { %2669 = vrot.lane.b32.xlu1 %v2659_v22, %s3539_s22 }
0x1b63   :  { %2680 = vrot.lane.b32.xlu0 %v2660_v21, %s3540_s1 }
0x1b66   :  { %2674 = vrot.lane.b32.xlu1 %v2659_v22, %s3541_s2 }
0x1b67   :  { %2690 = vrot.lane.b32.xlu0 %v2660_v21, %s3542_s13 }
0x1b6a   :  { %2695 = vrot.lane.b32.xlu1 %v2660_v21, %s3543_s23 }
0x1bd0   :  { %v2686_v37 = vpop.permute.xlu1 %2685 }
0x1bd1   :  { %v2665_v26 = vpop.permute.xlu0 %2664 }
0x1bd2   :  { %2668 = vst.msk [vmem:[#allocation3 - $0x2] sm:$0xc] %vm2667_vm9, %v2665_v26 }
0x1bd4   :  { %v2670_v28 = vpop.permute.xlu1 %2669 }
0x1bd5   :  { %2673 = vst.msk [vmem:[#allocation3 - $0x4] sm:$0x30] %vm2672_vm10, %v2670_v28  ;;  %v2681_v29 = vpop.permute.xlu0 %2680 }
0x1bd8   :  { %v2675_v30 = vpop.permute.xlu1 %2674 }
0x1bd9   :  { %2678 = vst.msk [vmem:[#allocation3 - $0x6] sm:$0xc0] %vm2677_vm11, %v2675_v30  ;;  %v2691_v32 = vpop.permute.xlu0 %2690 }
0x1bda   :  { %2684 = vst.msk [vmem:[#allocation3] sm:$0x3] %vm2683_vm12, %v2681_v29 }
0x1bdb   :  { %2689 = vst.msk [vmem:[#allocation3 - $0x2] sm:$0xc] %vm2688_vm13, %v2686_v37 }
0x1bdc   :  { %2694 = vst.msk [vmem:[#allocation3 - $0x4] sm:$0x30] %vm2693_vm14, %v2691_v32  ;;  %v2696_v34 = vpop.permute.xlu1 %2695 }
0x1bdd   :  { %2699 = vst.msk [vmem:[#allocation3 - $0x6] sm:$0xc0] %vm2698_vm15, %v2696_v34 }
0x1bde   :  { %3518 = shalt.err (!%p3515_p4)
}
0x1bdf   :  { %s3519_s3 = scalar_lea.hbm %s4143_s14, 32 }
0x1be0   :  { %p3520_p5 = scmp.ne.s32.totalorder %s4143_s14, %s3519_s3  ;;  %p3523_p6 = scmp.lt.u32.totalorder %s3519_s3, %s4143_s14 }
0x1be2   :  { %p3525_p7 = pnand %p3523_p6, %p3520_p5 }
0x1be4   :  { %3528 = shalt.err (!%p3525_p7)
}
0x1be5   :  { %2709 = dma.vmem_to_hbm [thread:$0]  %s2707_s25, 32, %s4143_s14, [#allocation4]  }
0x1be6   :  { %3529 = dma.done.wait [#allocation4], 32  }
0x1be7   :  { %3530 = vsyncadd [#allocation4], 4294967264 }
0x1be8   :  { %2713 = vsyncpa [#allocation4], 1 }

</bundles_post_ra>
